<compile_context>
chip_gen: v5e
topology: v5e:2x2
jax: 0.10.0
libtpu: 0.0.40
codegen_flags: <defaults>
</compile_context>

<pallas_src>
import math

import jax
import jax.numpy as jnp
from jax.experimental import pallas as pl
from jax.experimental.pallas import tpu as pltpu

_LANE = 128
_SUBLANE = 8
# Per-step output block budget (bytes).  Double-buffered (x2) this stays well
# under every generation's default scoped VMEM (v5e 16 MiB, v6e/v7x 32 MiB).
_OUT_BLOCK_BUDGET_BYTES = 4 * 1024 * 1024
# Below this many output elements, pallas_call fixed overhead (and lane
# padding for small half_dim) loses to plain XLA fusion.
_MIN_OUT_ELEMS_FOR_PALLAS = 1 << 16


def _round_up(x: int, m: int) -> int:
    return ((x + m - 1) // m) * m


def _time_emb_kernel(t_ref, f_ref, o_ref):
    # t_ref: (TB, 1) f32, f_ref: (1, half_dim) f32, o_ref: (TB, 2*half_dim).
    half = f_ref.shape[1]                    # static, multiple of 128
    emb = t_ref[...] * f_ref[...]            # broadcast -> (TB, half_dim) f32
    # Direct [sin | cos] layout; both stores are unmasked, lane-aligned vst's.
    # Compute stays f32 (EUP); cast only on store.
    o_ref[:, :half] = jnp.sin(emb).astype(o_ref.dtype)
    o_ref[:, half:] = jnp.cos(emb).astype(o_ref.dtype)


def _jnp_fallback(t, f, out_dtype):
    emb = t * f[None, :]
    return jnp.concatenate([jnp.sin(emb), jnp.cos(emb)], axis=-1).astype(out_dtype)


def sinusoidal_time_embedding(
    time_tensor: jax.Array,
    frequencies: jax.Array,
    *,
    out_dtype=jnp.float32,
    min_out_elems_for_pallas: int = _MIN_OUT_ELEMS_FOR_PALLAS,
) -> jax.Array:
    """Pallas equivalent of SinusoidalTimeEmbedding.forward.

    time_tensor: (B,) or (B, 1) float
    frequencies: (half_dim,) float (the registered buffer)
    returns:     (B, 2 * half_dim) == cat([sin(t*f), cos(t*f)], -1)
    """
    t = time_tensor.reshape(-1, 1).astype(jnp.float32)
    f = frequencies.reshape(-1).astype(jnp.float32)
    B = t.shape[0]
    half_dim = f.shape[0]
    dim = 2 * half_dim

    # Small-shape / non-lane-aligned fallback: XLA fusion wins here.
    if (half_dim % _LANE != 0) or (B * dim < min_out_elems_for_pallas):
        return _jnp_fallback(t, f, out_dtype)

    out_size = jnp.dtype(out_dtype).itemsize

    # --- Tile sizing (multiple of 8 sublanes, VMEM-budgeted, >=4 grid steps
    #     when B allows so v7x's 2 TCs get work and double-buffering kicks in).
    B8 = _round_up(B, _SUBLANE)
    tb_budget = max(
        _SUBLANE,
        (_OUT_BLOCK_BUDGET_BYTES // (dim * out_size)) // _SUBLANE * _SUBLANE,
    )
    n_steps = max(pl.cdiv(B8, tb_budget), min(4, B8 // _SUBLANE), 1)
    TB = _round_up(pl.cdiv(B8, n_steps), _SUBLANE)
    B_pad = _round_up(B, TB)
    if B_pad != B:
        t = jnp.pad(t, ((0, B_pad - B), (0, 0)))
    grid = (B_pad // TB,)

    f_row = f.reshape(1, half_dim)

    cost = pl.CostEstimate(
        flops=B_pad * half_dim,                 # one multiply per element
        transcendentals=2 * B_pad * half_dim,   # sin + cos
        bytes_accessed=B_pad * 4 + half_dim * 4 + B_pad * dim * out_size,
    )

    out = pl.pallas_call(
        _time_emb_kernel,
        out_shape=jax.ShapeDtypeStruct((B_pad, dim), out_dtype),
        grid_spec=pltpu.PrefetchScalarGridSpec(
            num_scalar_prefetch=0,
            grid=grid,
            in_specs=[
                pl.BlockSpec((TB, 1), lambda i: (i, 0)),          # time rows
                pl.BlockSpec((1, half_dim), lambda i: (0, 0)),    # frequency row
            ],
            out_specs=pl.BlockSpec((TB, dim), lambda i: (i, 0)),  # [sin | cos]
        ),
        compiler_params=pltpu.CompilerParams(
            dimension_semantics=("parallel",),  # shard batch tiles across TCs
        ),
        cost_estimate=cost,
    )(t, f_row)

    if B_pad != B:
        out = out[:B]
    return out


def make_frequencies(dim: int = 512, max_freq: float = 10000.0) -> jax.Array:
    """Deterministic buffer init, identical to the PyTorch __init__."""
    half_dim = dim // 2
    assert half_dim > 1, "dim must be >= 4 (PyTorch original divides by half_dim - 1)"
    emb_scale = math.log(max_freq) / (half_dim - 1)
    return jnp.exp(jnp.arange(half_dim, dtype=jnp.float32) * -emb_scale)


def _reference(time_tensor, frequencies):
    emb = time_tensor.reshape(-1, 1) * frequencies[None, :]
    return jnp.concatenate([jnp.sin(emb), jnp.cos(emb)], axis=-1)


if __name__ == "__main__":
    key = jax.random.PRNGKey(0)
    k_small, k_big = jax.random.split(key)

    # --- Case 1: tiny production-like shape (B=8, dim=32) -> jnp fallback path.
    B_s, DIM_s = 8, 32
    t_small = jax.random.uniform(k_small, (B_s, 1), dtype=jnp.float32) * 1000.0
    f_small = make_frequencies(dim=DIM_s)
    out_small = jax.block_until_ready(sinusoidal_time_embedding(t_small, f_small))
    ref_small = _reference(t_small, f_small)
    assert out_small.shape == (B_s, DIM_s), out_small.shape
    assert jnp.allclose(out_small, ref_small, atol=1e-5, rtol=1e-5)

    # --- Case 2: module-default dim (512 -> half_dim=256, lane-aligned) with a
    #     moderate batch: exercises the Pallas kernel path (f32 output).
    B_k, DIM_k = 128, 512
    t_big = jax.random.uniform(k_big, (B_k, 1), dtype=jnp.float32) * 1000.0
    f_big = make_frequencies(dim=DIM_k)
    out_big = jax.block_until_ready(sinusoidal_time_embedding(t_big, f_big))
    ref_big = _reference(t_big, f_big)
    assert out_big.shape == (B_k, DIM_k), out_big.shape
    assert jnp.allclose(out_big, ref_big, atol=1e-5, rtol=1e-5)

    # --- Case 3: same shape, bf16 output (compute f32, cast on store).
    out_bf16 = jax.block_until_ready(
        sinusoidal_time_embedding(t_big, f_big, out_dtype=jnp.bfloat16)
    )
    assert out_bf16.dtype == jnp.bfloat16
    assert jnp.allclose(out_bf16.astype(jnp.float32), ref_big, atol=2e-2, rtol=2e-2)

    print("KERNEL_OK")
</pallas_src>

<mosaic_0001>
module attributes {stable_mosaic.version = 11 : i64} {
  func.func @_time_emb_kernel(%arg0: i32, %arg1: memref<32x1xf32, #tpu.memory_space<vmem>>, %arg2: memref<1x256xf32, #tpu.memory_space<vmem>>, %arg3: memref<32x512xf32, #tpu.memory_space<vmem>>) attributes {dimension_semantics = [#tpu.dimension_semantics<parallel>], iteration_bounds = array<i64: 4>, scalar_prefetch = 0 : i64, scratch_operands = 0 : i64, tpu.core_type = #tpu.core_type<tc>, window_params = [{transform_indices = @transform_0, window_bounds = array<i64: 32, 1>}, {pipeline_mode = #tpu.pipeline_mode<synchronous>, transform_indices = @transform_1, window_bounds = array<i64: 1, 256>}, {transform_indices = @transform_2, window_bounds = array<i64: 32, 512>}]} {
    %c0 = arith.constant 0 : index
    %c0_0 = arith.constant 0 : index
    %0 = vector.load %arg1[%c0, %c0_0] : memref<32x1xf32, #tpu.memory_space<vmem>>, vector<32x1xf32>
    %c0_1 = arith.constant 0 : index
    %c0_2 = arith.constant 0 : index
    %1 = vector.load %arg2[%c0_1, %c0_2] : memref<1x256xf32, #tpu.memory_space<vmem>>, vector<1x256xf32>
    %2 = vector.broadcast %0 : vector<32x1xf32> to vector<32x256xf32>
    %3 = vector.broadcast %1 : vector<1x256xf32> to vector<32x256xf32>
    %4 = arith.mulf %2, %3 : vector<32x256xf32>
    %5 = math.sin %4 : vector<32x256xf32>
    %c0_3 = arith.constant 0 : index
    %c0_4 = arith.constant 0 : index
    %6 = vector.load %arg3[%c0_3, %c0_4] : memref<32x512xf32, #tpu.memory_space<vmem>>, vector<32x256xf32>
    tpu.vector_store %arg3[%c0_3, %c0_4], %5 {strides = array<i32>} : memref<32x512xf32, #tpu.memory_space<vmem>>, vector<32x256xf32>,
    %7 = math.cos %4 : vector<32x256xf32>
    %c0_5 = arith.constant 0 : index
    %c256 = arith.constant 256 : index
    %8 = vector.load %arg3[%c0_5, %c256] : memref<32x512xf32, #tpu.memory_space<vmem>>, vector<32x256xf32>
    tpu.vector_store %arg3[%c0_5, %c256], %7 {strides = array<i32>} : memref<32x512xf32, #tpu.memory_space<vmem>>, vector<32x256xf32>,
    return
  }
  func.func @transform_0(%arg0: i32) -> (i32, i32) {
    %c0_i32 = arith.constant 0 : i32
    %c0_i32_0 = arith.constant 0 : i32
    return %arg0, %c0_i32 : i32, i32
  }
  func.func @transform_1(%arg0: i32) -> (i32, i32) {
    %c0_i32 = arith.constant 0 : i32
    %c0_i32_0 = arith.constant 0 : i32
    %c0_i32_1 = arith.constant 0 : i32
    return %c0_i32, %c0_i32_0 : i32, i32
  }
  func.func @transform_2(%arg0: i32) -> (i32, i32) {
    %c0_i32 = arith.constant 0 : i32
    %c0_i32_0 = arith.constant 0 : i32
    return %arg0, %c0_i32 : i32, i32
  }
}

</mosaic_0001>

<bundles_post_ra>
// kernel: tpu_custom_call.1
= control target key start
LH: loop header
LB: loop body
LE: loop exit
PB: predicated region body
PF: predicated region fallthrough
CT: control target
= control target key end

     0   :  { %7 = vsyncpa [#allocation3], 0  ;;  %s4158_s0 = inlined_call_operand.vmem [shape: f32[128,1], index: 0, kind: input, shape index: {}]   ;;  %s4159_s1 = inlined_call_operand.vmem [shape: f32[1,256], index: 1, kind: input, shape index: {}]   ;;  %s4160_s2 = inlined_call_operand.hbm [shape: f32[128,512], index: 2, kind: output, shape index: {}]  }
   0x1   :  { %9 = vsyncpa [#allocation3 + $0x1], 0  ;;  %s2951_s9 = smov 0   ;;  %s2953_s10 = smov 0  }
   0x2   :  { %s2955_s11 = smov 0   ;;  %s2957_s12 = smov 0  }
   0x3 LB: > { %s2972_s13 = sadd.s32 4294967295, %s2925_s12   ;;  %s2750_s14 = sadd.s32 4294967294, %s2925_s12   ;;  %s2925_s12 = sphi %s2957_s12, %s4239_s12   ;;  %s2921_s11 = sphi %s2955_s11, %s4238_s11   ;;  %s2917_s10 = sphi %s2953_s10, %s4237_s10   ;;  %s2913_s9 = sphi %s2951_s9, %s4236_s9  }
   0x4   : > { %s2976_s15 = sadd.s32 1, %s2925_s12   ;;  %s69_s16 = sadd.s32 1, %s2921_s11 }
   0x5   : > { %s66_s17 = ssub.s32 %s2925_s12, %s2976_s15  ;;  %p79_p0 = scmp.ne.s32.totalorder %s2921_s11, %s2917_s10 }
   0x6   : > { %p67_p1 = scmp.eq.s32.totalorder %s66_s17, 0  ;;  %p80_p2 = scmp.eq.s32.totalorder %s2972_s13, 3 }
   0x7   : > { %p85_p3 = scmp.ne.s32.totalorder %s2917_s10, %s2913_s9  ;;  %p86_p4 = scmp.eq.s32.totalorder %s2750_s14, 3 }
   0x8   : > { %s2987_s18 = scalar_select %p67_p1, %s2921_s11, %s69_s16  }
   0x9   : > { %p2989_p5 = por %p80_p2, %p79_p0  ;;  %p2993_p6 = por %p86_p4, %p85_p3 }
   0xa   : > { %p2753_p7 = scmp.ge.s32.totalorder %s2925_s12, 1  ;;  %p116_p8 = scmp.lt.s32.totalorder %s2925_s12, 5 }
   0xc   : > { %p117_p9 = pnand %p2753_p7, %p116_p8 }
   0xd   : > { %s2755_s21 = sshll.u32 (!%p117_p9), %s2972_s13, 2  ;;  %s135_s28 = sand.u32 (!%p117_p9), 1, %s2917_s10  }
   0xe   : > { %120 = sbr.rel (%p117_p9) target bundleno = 489 (0x1e9), region = 28  ;;  %p139_p10 = scmp.lt.s32.totalorder (!%p117_p9), %s2755_s21, 15 }
   0xf   : > { %s2754_s29 = sshll.u32 (!%p117_p9), %s135_s28, 7  ;;  %s2812_s3 = sshll.u32 (!%p117_p9), %s2972_s13, 7 }
  0x10   : > { %s3353_s30 = scalar_lea.vmem (!%p117_p9), [#allocation2], %s2754_s29  ;;  %s2684_s6 = scalar_lea.hbm (!%p117_p9), %s4160_s2, %s2812_s3 }
  0x11   : > { %s2685_s7 = sshll.u32 (!%p117_p9), %s3353_s30, 4  ;;  %s2687_s8 = sshll.u32 (!%p117_p9), %s2684_s6, 4  ;;  %s2686_s7 = int_to_ptr.vmem [resolvable:$true] %s2685_s7  ;;  %s2688_s8 = int_to_ptr.hbm [resolvable:$true] %s2687_s8 }
  0x12   : > { %s2672_s13 = scalar_lea.sflag (!%p117_p9), [#allocation3], %s135_s28  ;;  %s2877_s14 = sshra.s32 (!%p117_p9), %s2688_s8, 4  ;;  %s2878_s14 = int_to_ptr.hbm [resolvable:$true] %s2877_s14 }
  0x13   : > { %v2927_v0 = vmov 0   ;;  %s4241_s21 = smov (!%p139_p10, %s2755_s21), 15  ;;  %v149_v5 = vld [vmem:[%s4159_s1] sm:$0x3]  ;;  %v4184_v38 = vmov 683565275   ;;  %p2884_p0 = scmp.lt.s32.totalorder %s2878_s14, %s4160_s2 }
  0x14   : > { %2862 = vset.pattern.permute.xlu1 %v2927_v0  ;;  %2861 = vset.pattern.permute.xlu0 %v2927_v0  ;;  %s2756_s22 = sshll.u32 %s4241_s21, 3  ;;  %v3008_v6 = vperm.slane %v149_v5, 0  ;;  %v3010_v7 = vperm.slane %v149_v5, 1  ;;  %v2929_v40 = vmov 2475754826   ;;  %s2879_s16 = scalar_lea.hbm %s2878_s14, 128 }
  0x15   : > { %s142_s25 = scalar_lea.vmem %s4158_s0, %s2756_s22  ;;  %v4179_v44 = vmov 2131351028   ;;  %v4172_v47 = vmov 2102212464   ;;  %v4177_v50 = vmov 920167782   ;;  %p2880_p11 = scmp.ne.s32.totalorder %s2878_s14, %s2879_s16 }
  0x16   : > { %v147_v1 = vld [vmem:[%s142_s25 + $0x10] sm:$0xff]  ;;  %v145_v2 = vld [vmem:[%s142_s25] sm:$0xff]  ;;  %v148_v3 = vld [vmem:[%s142_s25 + $0x18] sm:$0xff]  ;;  %v4176_v53 = vmov 1326507024   ;;  %s2883_s22 = scalar_lea.hbm %s4160_s2, 512 }
  0x17   : > { %162 = vperm.xlu1 %2862, %v147_v1   ;;  %152 = vperm.xlu0 %2861, %v145_v2   ;;  %v146_v4 = vld [vmem:[%s142_s25 + $0x8] sm:$0xff]  ;;  %p2881_p12 = pnand %p2880_p11, %p2989_p5  ;;  %p2885_p1 = scmp.lt.s32.totalorder %s2883_s22, %s2879_s16 }
  0x19   : > { %p2882_p13 = pneg %p2881_p12  ;;  %p2886_p2 = por %p2885_p1, %p2884_p0 }
  0x1b   : > { %p2887_p3 = pnand %p2886_p2, %p2882_p13 }
  0x1f   : > { %167 = vperm.xlu1 %2862, %v148_v3   ;;  %157 = vperm.xlu0 %2861, %v146_v4  }
  0x89   : > { %v153_v8 = vpop.permute.xlu0 %152 }
  0x8a   : > { %v3013_v9 = vmul.f32 %v3008_v6, %v153_v8  ;;  %v3016_v10 = vmul.f32 %v3010_v7, %v153_v8 }
  0x8c   : > { %v183_v11 = vand.u32 2147483647, %v3013_v9  ;;  %v186_v12 = vand.u32 2139095040, %v3013_v9  ;;  %v338_v13 = vand.u32 2147483647, %v3016_v10  ;;  %v341_v14 = vand.u32 2139095040, %v3016_v10 }
  0x8e   : > { %v187_v15 = vshrl.u32 %v186_v12, 23  ;;  %v190_v16 = vand.u32 8388607, %v183_v11  ;;  %v342_v17 = vshrl.u32 %v341_v14, 23  ;;  %v345_v18 = vand.u32 8388607, %v338_v13 }
  0x90   : > { %v2757_v19 = vadd.s32 4294967169, %v187_v15  ;;  %v191_v21 = vor.u32 8388608, %v190_v16  ;;  %v2760_v22 = vadd.s32 4294967169, %v342_v17  ;;  %v346_v23 = vor.u32 8388608, %v345_v18 }
  0x91   : > { %v3026_v20 = vpop.permute.xlu0 %157 }
  0x92   : > { %v193_v24 = vadd.s32 1, %v2757_v19  ;;  %v348_v25 = vadd.s32 1, %v2760_v22  ;;  %v3030_v26 = vmul.f32 %v3008_v6, %v3026_v20  ;;  %v3032_v27 = vshll.u32 %v191_v21, 8 }
  0x93   : > { %v3034_v30 = vshll.u32 %v346_v23, 8 }
  0x94   : > { %vm194_vm0 = vcmp.gt.s32.totalorder %v193_v24, 0  ;;  %vm349_vm1 = vcmp.gt.s32.totalorder %v348_v25, 0  ;;  %v496_v32 = vand.u32 2139095040, %v3030_v26  ;;  %v3038_v34 = vand.u32 65535, %v3032_v27 }
  0x95   : > { %v195_v28 = vsel %vm194_vm0, %v193_v24, 0  ;;  %v350_v29 = vsel %vm349_vm1, %v348_v25, 0  ;;  %v3041_v35 = vshrl.u32 %v3032_v27, 16  ;;  %v3050_v42 = vand.u32 65535, %v3034_v30 }
  0x96   : > { %v197_v31 = vand.u32 31, %v195_v28  ;;  %v3043_v36 = vand.u32 31, %v350_v29  ;;  %v3045_v37 = vshrl.u32 %v195_v28, 5  ;;  %v3092_v25 = vshrl.u32 %v350_v29, 5 }
  0x98   : > { %v198_v33 = vsub.s32 32, %v197_v31  ;;  %v200_v39 = vshll.u32 %v4184_v38, %v197_v31  ;;  %v203_v41 = vshll.u32 %v2929_v40, %v197_v31  ;;  %v206_v46 = vshll.u32 %v4179_v44, %v197_v31 }
  0x99   : > { %v209_v49 = vshll.u32 %v4172_v47, %v197_v31  ;;  %v212_v52 = vshll.u32 %v4177_v50, %v197_v31  ;;  %v3061_v58 = vsub.s32 32, %v3043_v36  ;;  %vm215_vm2 = vcmp.lt.s32.totalorder %v3045_v37, 1 }
  0x9a   : > { %v201_v43 = vshrl.u32 %v2929_v40, %v198_v33  ;;  %v204_v45 = vshrl.u32 %v4179_v44, %v198_v33  ;;  %v207_v48 = vshrl.u32 %v4172_v47, %v198_v33  ;;  %v210_v51 = vshrl.u32 %v4177_v50, %v198_v33 }
  0x9b   : > { %v213_v54 = vshrl.u32 %v4176_v53, %v198_v33  ;;  %vm216_vm3 = vcmp.lt.s32.totalorder %v3045_v37, 2  ;;  %v199_v61 = vshrl.u32 %v4184_v38, %v198_v33  ;;  %vm218_vm4 = vcmp.lt.s32.totalorder %v3045_v37, 4 }
  0x9c   : > { %v202_v55 = vor.u32 %v201_v43, %v200_v39  ;;  %v205_v56 = vor.u32 %v204_v45, %v203_v41  ;;  %v208_v57 = vor.u32 %v207_v48, %v206_v46  ;;  %v211_v59 = vor.u32 %v210_v51, %v209_v49 }
  0x9d   : > { %v214_v60 = vor.u32 %v213_v54, %v212_v52  ;;  %vm217_vm5 = vcmp.lt.s32.totalorder %v3045_v37, 3  ;;  %v355_v3 = vshll.u32 %v4184_v38, %v3043_v36  ;;  %v356_v12 = vshrl.u32 %v2929_v40, %v3061_v58 }
  0x9e   : > { %v223_v62 = vsel %vm215_vm2, %v202_v55, %v205_v56  ;;  %v227_v63 = vsel %vm215_vm2, %v205_v56, %v208_v57  ;;  %v224_v1 = vsel %vm218_vm4, %v211_v59, 920167782  ;;  %v220_v4 = vsel %vm218_vm4, %v208_v57, 2102212464 }
  0x9f   : > { %v228_v2 = vsel %vm218_vm4, %v214_v60, 1326507024  ;;  %v225_v5 = vsel %vm217_vm5, %v208_v57, %v224_v1  ;;  %v358_v16 = vshll.u32 %v2929_v40, %v3043_v36  ;;  %v359_v17 = vshrl.u32 %v4179_v44, %v3061_v58 }
  0xa0   : > { %v229_v8 = vsel %vm217_vm5, %v211_v59, %v228_v2  ;;  %v226_v14 = vsel %vm216_vm3, %v223_v62, %v225_v5  ;;  %v219_v23 = vsel %vm215_vm2, %v199_v61, %v202_v55  ;;  %v221_v24 = vsel %vm217_vm5, %v205_v56, %v220_v4 }
  0xa1   : > { %v230_v15 = vsel %vm216_vm3, %v227_v63, %v229_v8  ;;  %v256_v21 = vand.u32 65535, %v226_v14  ;;  %v257_v22 = vshrl.u32 %v226_v14, 16  ;;  %v3094_v28 = vor.u32 %v356_v12, %v355_v3 }
  0xa2   : > { %v234_v18 = vand.u32 65535, %v230_v15  ;;  %v235_v19 = vshrl.u32 %v230_v15, 16  ;;  %v3098_v39 = vor.u32 %v359_v17, %v358_v16  ;;  %v362_v41 = vshrl.u32 %v4172_v47, %v3061_v58 }
  0xa3   : > { %v259_v45 = vmul.u32 %v257_v22, %v3038_v34  ;;  %v260_v46 = vmul.u32 %v256_v21, %v3041_v35  ;;  %v361_v29 = vshll.u32 %v4179_v44, %v3043_v36  ;;  %v258_v51 = vmul.u32 %v256_v21, %v3038_v34 }
  0xa4   : > { %v237_v31 = vmul.u32 %v235_v19, %v3038_v34  ;;  %v238_v33 = vmul.u32 %v234_v18, %v3041_v35  ;;  %v236_v43 = vmul.u32 %v234_v18, %v3038_v34  ;;  %v239_v48 = vmul.u32 %v235_v19, %v3041_v35 }
  0xa5   : > { %v261_v52 = vmul.u32 %v257_v22, %v3041_v35  ;;  %v262_v57 = vshll.u32 %v259_v45, 16  ;;  %v264_v60 = vshll.u32 %v260_v46, 16  ;;  %v363_v61 = vor.u32 %v362_v41, %v361_v29 }
  0xa6   : > { %v240_v49 = vshll.u32 %v237_v31, 16  ;;  %v241_v54 = vshrl.u32 %v237_v31, 16  ;;  %v242_v55 = vshll.u32 %v238_v33, 16  ;;  %v243_v56 = vshrl.u32 %v238_v33, 16 }
  0xa7   : > { %vm266_vm7 = vc.u32 %v258_v51, %v262_v57  ;;  %v268_v63 = vadd.s32 %v262_v57, %v258_v51  ;;  %v365_v1 = vshrl.u32 %v4177_v50, %v3061_v58  ;;  %v364_v35 = vshll.u32 %v4172_v47, %v3043_v36 }
  0xa8   : > { %vm244_vm6 = vc.u32 %v236_v43, %v240_v49  ;;  %v246_v59 = vadd.s32 %v240_v49, %v236_v43  ;;  %v267_v34 = vsel %vm266_vm7, 1, %v2927_v0  ;;  %v367_v5 = vshll.u32 %v4177_v50, %v3043_v36 }
  0xa9   : > { %v245_v62 = vsel %vm244_vm6, 1, %v2927_v0  ;;  %v269_v4 = vadd.s32 %v267_v34, %v261_v52  ;;  %vm270_vm9 = vc.u32 %v268_v63, %v264_v60  ;;  %v366_v14 = vor.u32 %v365_v1, %v364_v35 }
  0xaa   : > { %v247_v2 = vadd.s32 %v245_v62, %v239_v48  ;;  %vm248_vm8 = vc.u32 %v246_v59, %v242_v55  ;;  %v271_v12 = vsel %vm270_vm9, 1, %v2927_v0  ;;  %v368_v15 = vshrl.u32 %v4176_v53, %v3061_v58 }
  0xab   : > { %v249_v3 = vsel %vm248_vm8, 1, %v2927_v0  ;;  %v263_v16 = vshrl.u32 %v259_v45, 16  ;;  %v265_v17 = vshrl.u32 %v260_v46, 16  ;;  %v3122_v18 = vadd.s32 %v268_v63, %v264_v60 }
  0xac   : > { %v251_v8 = vadd.s32 %v249_v3, %v247_v2  ;;  %v273_v19 = vadd.s32 %v271_v12, %v269_v4  ;;  %v369_v22 = vor.u32 %v368_v15, %v367_v5  ;;  %vm370_vm10 = vcmp.lt.s32.totalorder %v3092_v25, 1 }
  0xad   : > { %vm373_vm11 = vcmp.lt.s32.totalorder %v3092_v25, 4  ;;  %vm372_vm12 = vcmp.lt.s32.totalorder %v3092_v25, 3  ;;  %v378_v36 = vsel %vm370_vm10, %v3094_v28, %v3098_v39  ;;  %vm371_vm13 = vcmp.lt.s32.totalorder %v3092_v25, 2 }
  0xae   : > { %v252_v21 = vadd.s32 %v251_v8, %v241_v54  ;;  %v274_v31 = vadd.s32 %v273_v19, %v263_v16  ;;  %v379_v33 = vsel %vm373_vm11, %v366_v14, 920167782  ;;  %v382_v45 = vsel %vm370_vm10, %v3098_v39, %v363_v61 }
  0xaf   : > { %v380_v43 = vsel %vm372_vm12, %v363_v61, %v379_v33  ;;  %v222_v46 = vsel %vm216_vm3, %v219_v23, %v221_v24  ;;  %v383_v49 = vsel %vm373_vm11, %v369_v22, 1326507024  ;;  %v388_v52 = vshrl.u32 %v3034_v30, 16 }
  0xb0   : > { %v3133_v41 = vadd.s32 %v252_v21, %v243_v56  ;;  %v275_v29 = vadd.s32 %v274_v31, %v265_v17  ;;  %v381_v48 = vsel %vm371_vm13, %v378_v36, %v380_v43  ;;  %v384_v51 = vsel %vm372_vm12, %v366_v14, %v383_v49 }
  0xb1   : > { %v411_v54 = vand.u32 65535, %v381_v48  ;;  %v385_v37 = vsel %vm371_vm13, %v382_v45, %v384_v51  ;;  %v412_v23 = vshrl.u32 %v381_v48, 16  ;;  %v497_v24 = vshrl.u32 %v496_v32, 23 }
  0xb2   : > { %vm278_vm14 = vc.u32 %v3133_v41, %v3122_v18  ;;  %v279_v55 = vadd.s32 1, %v275_v29  ;;  %v276_v56 = vmul.u32 %v3032_v27, %v222_v46  ;;  %v389_v57 = vand.u32 65535, %v385_v37 }
  0xb3   : > { %v390_v59 = vshrl.u32 %v385_v37, 16  ;;  %v493_v60 = vand.u32 2147483647, %v3030_v26  ;;  %v354_v63 = vshrl.u32 %v4184_v38, %v3061_v58  ;;  %v414_v1 = vmul.u32 %v412_v23, %v3050_v42 }
  0xb4   : > { %v280_v62 = vsel %vm278_vm14, %v279_v55, %v275_v29  ;;  %v415_v2 = vmul.u32 %v411_v54, %v388_v52  ;;  %v375_v35 = vsel %vm373_vm11, %v363_v61, 2102212464  ;;  %v393_v32 = vmul.u32 %v389_v57, %v388_v52 }
  0xb5   : > { %v281_v34 = vadd.s32 %v280_v62, %v276_v56  ;;  %v392_v3 = vmul.u32 %v390_v59, %v3050_v42  ;;  %v413_v27 = vmul.u32 %v411_v54, %v3050_v42  ;;  %v416_v4 = vmul.u32 %v412_v23, %v388_v52 }
  0xb6   : > { %v417_v5 = vshll.u32 %v414_v1, 16  ;;  %v2763_v8 = vadd.s32 4294967169, %v497_v24  ;;  %v391_v14 = vmul.u32 %v389_v57, %v3050_v42  ;;  %v394_v15 = vmul.u32 %v390_v59, %v388_v52 }
  0xb7   : > { %v282_v12 = vadd.s32 536870912, %v281_v34  ;;  %v395_v58 = vshll.u32 %v392_v3, 16  ;;  %v397_v16 = vshll.u32 %v393_v32, 16  ;;  %v419_v17 = vshll.u32 %v415_v2, 16 }
  0xb8   : > { %vm421_vm15 = vc.u32 %v413_v27, %v417_v5  ;;  %v423_v19 = vadd.s32 %v417_v5, %v413_v27  ;;  %v500_v33 = vand.u32 8388607, %v493_v60  ;;  %v374_v42 = vsel %vm370_vm10, %v354_v63, %v3094_v28 }
  0xb9   : > { %v283_v21 = vshrl.u32 %v282_v12, 30  ;;  %vm399_vm0 = vc.u32 %v391_v14, %v395_v58  ;;  %v401_v61 = vadd.s32 %v395_v58, %v391_v14  ;;  %v422_v22 = vsel %vm421_vm15, 1, %v2927_v0 }
  0xba   : > { %v400_v31 = vsel %vm399_vm0, 1, %v2927_v0  ;;  %v424_v36 = vadd.s32 %v422_v22, %v416_v4  ;;  %vm425_vm1 = vc.u32 %v423_v19, %v419_v17  ;;  %v376_v46 = vsel %vm372_vm12, %v3098_v39, %v375_v35  ;;  %v3211_v22 = vpop.permute.xlu1 %162 }
  0xbb   : > { %v284_v43 = vshll.u32 %v283_v21, 30  ;;  %v402_v45 = vadd.s32 %v400_v31, %v394_v15  ;;  %vm403_vm2 = vc.u32 %v401_v61, %v397_v16  ;;  %v426_v48 = vsel %vm425_vm1, 1, %v2927_v0 }
  0xbc   : > { %v404_v29 = vsel %vm403_vm2, 1, %v2927_v0  ;;  %v503_v49 = vadd.s32 1, %v2763_v8  ;;  %v396_v52 = vshrl.u32 %v392_v3, 16  ;;  %v428_v55 = vadd.s32 %v426_v48, %v424_v36 }
  0xbd   : > { %v285_v51 = vsub.s32 %v281_v34, %v284_v43  ;;  %v406_v54 = vadd.s32 %v404_v29, %v402_v45  ;;  %vm185_vm3 = vcmp.lt.s32.totalorder %v3013_v9, 0  ;;  %v307_v37 = vsub.s32 4, %v283_v21 }
  0xbe   : > { %v418_v23 = vshrl.u32 %v414_v1, 16  ;;  %vm504_vm4 = vcmp.gt.s32.totalorder %v503_v49, 0  ;;  %v398_v24 = vshrl.u32 %v393_v32, 16  ;;  %v377_v39 = vsel %vm371_vm13, %v374_v42, %v376_v46 }
  0xbf   : > { %vm286_vm5 = vcmp.lt.s32.totalorder %v285_v51, 0  ;;  %v287_v28 = vsub.s32 0, %v285_v51  ;;  %v407_v56 = vadd.s32 %v406_v54, %v396_v52  ;;  %v420_v57 = vshrl.u32 %v415_v2, 16 }
  0xc0   : > { %v429_v59 = vadd.s32 %v428_v55, %v418_v23  ;;  %v505_v62 = vsel %vm504_vm4, %v503_v49, 0  ;;  %v3183_v35 = vadd.s32 %v423_v19, %v419_v17  ;;  %v501_v3 = vor.u32 8388608, %v500_v33 }
  0xc1   : > { %v288_v63 = vsel %vm286_vm5, %v287_v28, %v285_v51  ;;  %v3181_v34 = vadd.s32 %v407_v56, %v398_v24  ;;  %v308_v1 = vsel %vm185_vm3, %v307_v37, %v283_v21  ;;  %v507_v5 = vand.u32 31, %v505_v62 }
  0xc2   : > { %v289_v27 = vclz %v288_v63  ;;  %v430_v4 = vadd.s32 %v429_v59, %v420_v57  ;;  %vm3189_vm6 = vcmp.le.f32.partialorder %v183_v11, 0.7853982  ;;  %v277_v2 = vadd.s32 %v3122_v18, %v3133_v41 }
  0xc3   : > { %v431_v32 = vmul.u32 %v3034_v30, %v377_v39  ;;  %vm433_vm7 = vc.u32 %v3181_v34, %v3183_v35  ;;  %v508_v14 = vsub.s32 32, %v507_v5  ;;  %v3200_v15 = vsel %vm3189_vm6, 0, %v308_v1 }
  0xc4   : > { %v2758_v8 = vadd.s32 4294967294, %v289_v27  ;;  %v434_v12 = vadd.s32 1, %v430_v4  ;;  %v3202_v58 = vshrl.u32 %v505_v62, 5  ;;  %v510_v11 = vshll.u32 %v4184_v38, %v507_v5 }
  0xc5   : > { %v3205_v16 = vshll.u32 %v501_v3, 8  ;;  %v511_v30 = vshrl.u32 %v2929_v40, %v508_v14  ;;  %v513_v41 = vshll.u32 %v2929_v40, %v507_v5  ;;  %v514_v21 = vshrl.u32 %v4179_v44, %v508_v14 }
  0xc6   : > { %vm2759_vm8 = vcmp.lt.s32.totalorder %v2758_v8, 0  ;;  %v435_v18 = vsel %vm433_vm7, %v434_v12, %v430_v4  ;;  %v516_v61 = vshll.u32 %v4179_v44, %v507_v5  ;;  %v517_v33 = vshrl.u32 %v4172_v47, %v508_v14 }
  0xc7   : > { %v292_v17 = vsel %vm2759_vm8, 0, %v2758_v8  ;;  %v436_v19 = vadd.s32 %v435_v18, %v431_v32  ;;  %v519_v43 = vshll.u32 %v4172_v47, %v507_v5  ;;  %v512_v46 = vor.u32 %v511_v30, %v510_v11 }
  0xc8   : > { %v293_v31 = vsub.s32 32, %v292_v17  ;;  %v297_v36 = vsub.s32 4294967266, %v292_v17  ;;  %v294_v42 = vshll.u32 %v285_v51, %v292_v17  ;;  %v520_v29 = vshrl.u32 %v4177_v50, %v508_v14 }
  0xc9   : > { %v437_v45 = vadd.s32 536870912, %v436_v19  ;;  %v3216_v52 = vor.u32 %v514_v21, %v513_v41  ;;  %v523_v54 = vshrl.u32 %v4176_v53, %v508_v14  ;;  %v3221_v55 = vmul.f32 %v3010_v7, %v3026_v20 }
  0xca   : > { %v295_v48 = vshrl.u32 %v277_v2, %v293_v31  ;;  %v298_v49 = vadd.s32 127, %v297_v36  ;;  %v3225_v37 = vmul.f32 %v3008_v6, %v3211_v22  ;;  %v521_v51 = vor.u32 %v520_v29, %v519_v43 }
  0xcb   : > { %v438_v23 = vshrl.u32 %v437_v45, 30  ;;  %v518_v56 = vor.u32 %v517_v33, %v516_v61  ;;  %v522_v39 = vshll.u32 %v4177_v50, %v507_v5  ;;  %v327_v57 = vadd.s32 3, %v3200_v15 }
  0xcc   : > { %v296_v28 = vor.u32 %v295_v48, %v294_v42  ;;  %v299_v24 = vshll.u32 %v298_v49, 23  ;;  %vm525_vm9 = vcmp.lt.s32.totalorder %v3202_v58, 1  ;;  %v542_v62 = vand.u32 65535, %v3205_v16 }
  0xcd   : > { %v439_v59 = vshll.u32 %v438_v23, 30  ;;  %vm340_vm10 = vcmp.lt.s32.totalorder %v3016_v10, 0  ;;  %v524_v63 = vor.u32 %v523_v54, %v522_v39  ;;  %vm528_vm11 = vcmp.lt.s32.totalorder %v3202_v58, 4 }
  0xce   : > { %v300_v20 = vor.u32 4788187, %v299_v24  ;;  %v533_v3 = vsel %vm525_vm9, %v512_v46, %v3216_v52  ;;  %vm527_vm12 = vcmp.lt.s32.totalorder %v3202_v58, 3  ;;  %v534_v1 = vsel %vm528_vm11, %v521_v51, 920167782 }
  0xcf   : > { %v3236_v27 = vsub.s32 %v436_v19, %v439_v59  ;;  %v543_v4 = vshrl.u32 %v3205_v16, 16  ;;  %v303_v2 = vcvt.s32.f32 %v296_v28  ;;  %vm526_vm13 = vcmp.lt.s32.totalorder %v3202_v58, 2 }
  0xd0   : > { %v301_v5 = vand.u32 2147483647, %v300_v20  ;;  %v535_v32 = vsel %vm527_vm12, %v518_v56, %v534_v1  ;;  %v3245_v8 = vand.u32 3, %v327_v57  ;;  %v509_v30 = vshrl.u32 %v4184_v38, %v508_v14 }
  0xd1   : > { %vm441_vm14 = vcmp.lt.s32.totalorder %v3236_v27, 0  ;;  %v442_v12 = vsub.s32 0, %v3236_v27  ;;  %v536_v11 = vsel %vm526_vm13, %v533_v3, %v535_v32  ;;  %v537_v41 = vsel %vm525_vm9, %v3216_v52, %v518_v56 }
  0xd2   : > { %v304_v18 = vmul.f32 %v303_v2, %v301_v5  ;;  %v538_v17 = vsel %vm528_vm11, %v524_v63, 1326507024  ;;  %v462_v21 = vsub.s32 4, %v438_v23  ;;  %v566_v31 = vand.u32 65535, %v536_v11 }
  0xd3   : > { %v443_v19 = vsel %vm441_vm14, %v442_v12, %v3236_v27  ;;  %v539_v61 = vsel %vm527_vm12, %v521_v51, %v538_v17  ;;  %v567_v14 = vshrl.u32 %v536_v11, 16  ;;  %v432_v42 = vadd.s32 %v3183_v35, %v3181_v34 }
  0xd4   : > { %v305_v36 = vxor.u32 2147483648, %v304_v18  ;;  %v444_v33 = vclz %v443_v19  ;;  %v540_v43 = vsel %vm526_vm13, %v537_v41, %v539_v61  ;;  %v3266_v45 = vsel %vm525_vm9, %v509_v30, %v512_v46 }
  0xd5   : > { %v544_v29 = vand.u32 65535, %v540_v43  ;;  %v648_v48 = vand.u32 2147483647, %v3221_v55  ;;  %v530_v51 = vsel %vm528_vm11, %v518_v56, 2102212464  ;;  %v545_v28 = vshrl.u32 %v540_v43, 16 }
  0xd6   : > { %v306_v49 = vsel %vm185_vm3, %v305_v36, %v304_v18  ;;  %v2761_v54 = vadd.s32 4294967294, %v444_v33  ;;  %v3280_v34 = vsel %vm340_vm10, %v462_v21, %v438_v23  ;;  %v568_v46 = vmul.u32 %v566_v31, %v542_v62 }
  0xd7   : > { %v3276_v24 = vsel %vm3189_vm6, %v3013_v9, %v306_v49  ;;  %v548_v35 = vmul.u32 %v544_v29, %v543_v4  ;;  %v547_v57 = vmul.u32 %v545_v28, %v542_v62  ;;  %v3284_v59 = vmul.u32 %v567_v14, %v542_v62 }
  0xd8   : > { %v311_v39 = vmul.f32 %v3276_v24, %v3276_v24  ;;  %vm2762_vm15 = vcmp.lt.s32.totalorder %v2761_v54, 0  ;;  %v546_v20 = vmul.u32 %v544_v29, %v542_v62  ;;  %v549_v63 = vmul.u32 %v545_v28, %v543_v4 }
  0xd9   : > { %v447_v56 = vsel %vm2762_vm15, 0, %v2761_v54  ;;  %v3286_v3 = vmul.u32 %v566_v31, %v543_v4  ;;  %v552_v2 = vshll.u32 %v548_v35, 16  ;;  %v550_v32 = vshll.u32 %v547_v57, 16 }
  0xda   : > { %v312_v25 = vmul.f32 -0.001358992, %v311_v39  ;;  %v319_v1 = vmul.f32 -0.00019511016, %v311_v39  ;;  %v448_v5 = vsub.s32 32, %v447_v56  ;;  %v452_v23 = vsub.s32 4294967266, %v447_v56 }
  0xdb   : > { %v553_v12 = vshrl.u32 %v548_v35, 16  ;;  %v571_v11 = vmul.u32 %v567_v14, %v543_v4  ;;  %v449_v41 = vshll.u32 %v3236_v27, %v447_v56  ;;  %vm554_vm0 = vc.u32 %v546_v20, %v550_v32 }
  0xdc   : > { %v313_v18 = vadd.f32 0.041655596, %v312_v25  ;;  %v320_v30 = vadd.f32 0.008332121, %v319_v1  ;;  %v450_v17 = vshrl.u32 %v432_v42, %v448_v5  ;;  %v453_v19 = vadd.s32 127, %v452_v23 }
  0xdd   : > { %v556_v21 = vadd.s32 %v550_v32, %v546_v20  ;;  %v572_v62 = vshll.u32 %v3284_v59, 16  ;;  %v555_v33 = vsel %vm554_vm0, 1, %v2927_v0  ;;  %vm3293_vm1 = vcmp.le.f32.partialorder %v338_v13, 0.7853982 }
  0xde   : > { %v314_v61 = vmul.f32 %v313_v18, %v311_v39  ;;  %v321_v31 = vmul.f32 %v320_v30, %v311_v39  ;;  %v451_v36 = vor.u32 %v450_v17, %v449_v41  ;;  %v454_v4 = vshll.u32 %v453_v19, 23 }
  0xdf   : > { %v551_v14 = vshrl.u32 %v547_v57, 16  ;;  %v557_v27 = vadd.s32 %v555_v33, %v549_v63  ;;  %vm558_vm2 = vc.u32 %v556_v21, %v552_v2  ;;  %v574_v54 = vshll.u32 %v3286_v3, 16 }
  0xe0   : > { %v315_v42 = vadd.f32 -0.4999988, %v314_v61  ;;  %v322_v29 = vadd.f32 -0.16666654, %v321_v31  ;;  %v559_v49 = vsel %vm558_vm2, 1, %v2927_v0  ;;  %vm330_vm3 = vcmp.eq.s32.totalorder %v3245_v8, 0 }
  0xe1   : > { %v455_v28 = vor.u32 4788187, %v454_v4  ;;  %v561_v35 = vadd.s32 %v559_v49, %v557_v27  ;;  %vm576_vm4 = vc.u32 %v568_v46, %v572_v62  ;;  %v578_v13 = vadd.s32 %v572_v62, %v568_v46 }
  0xe2   : > { %v316_v56 = vmul.f32 %v315_v42, %v311_v39  ;;  %v323_v20 = vmul.f32 %v322_v29, %v311_v39  ;;  %vm329_vm5 = vcmp.lt.s32.totalorder %v3245_v8, 2  ;;  %v458_v57 = vcvt.s32.f32 %v451_v36 }
  0xe3   : > { %v577_v63 = vsel %vm576_vm4, 1, %v2927_v0  ;;  %v456_v25 = vand.u32 2147483647, %v455_v28  ;;  %v562_v1 = vadd.s32 %v561_v35, %v551_v14  ;;  %vm580_vm6 = vc.u32 %v578_v13, %v574_v54 }
  0xe4   : > { %v579_v5 = vadd.s32 %v577_v63, %v571_v11  ;;  %v3303_v2 = vadd.f32 1.0, %v316_v56  ;;  %v324_v23 = vadd.f32 1.0, %v323_v20  ;;  %v531_v46 = vsel %vm527_vm12, %v3216_v52, %v530_v51 }
  0xe5   : > { %v581_v39 = vsel %vm580_vm6, 1, %v2927_v0  ;;  %v459_v32 = vmul.f32 %v458_v57, %v456_v25  ;;  %v563_v18 = vadd.s32 %v562_v1, %v553_v12  ;;  %v573_v30 = vshrl.u32 %v3284_v59, 16 }
  0xe6   : > { %v583_v41 = vadd.s32 %v581_v39, %v579_v5  ;;  %v3311_v17 = vmul.f32 %v324_v23, %v3276_v24  ;;  %vm333_vm7 = vcmp.eq.s32.totalorder %v3245_v8, 2  ;;  %v4166_v11 = vxor.u32 2147483648, %v3303_v2 }
  0xe7   : > { %v651_v19 = vand.u32 2139095040, %v3221_v55  ;;  %v460_v21 = vxor.u32 2147483648, %v459_v32  ;;  %v575_v52 = vshrl.u32 %v3286_v3, 16  ;;  %v582_v51 = vadd.s32 %v578_v13, %v574_v54 }
  0xe8   : > { %v584_v62 = vadd.s32 %v583_v41, %v573_v30  ;;  %v4164_v12 = vxor.u32 2147483648, %v3311_v17  ;;  %v3323_v24 = vsel %vm3293_vm1, 0, %v3280_v34  ;;  %v532_v59 = vsel %vm526_vm13, %v3266_v45, %v531_v46 }
  0xe9   : > { %v652_v61 = vshrl.u32 %v651_v19, 23  ;;  %v461_v31 = vsel %vm340_vm10, %v460_v21, %v459_v32  ;;  %vm588_vm8 = vc.u32 %v563_v18, %v582_v51  ;;  %v655_v3 = vand.u32 8388607, %v648_v48 }
  0xea   : > { %v585_v36 = vadd.s32 %v584_v62, %v575_v52  ;;  %v332_v34 = vsel %vm330_vm3, %v3303_v2, %v4164_v12  ;;  %v335_v58 = vsel %vm333_vm7, %v4166_v11, %v3311_v17  ;;  %v464_v45 = vsel %vm3293_vm1, %v3016_v10, %v461_v31 }
  0xeb   : > { %v2766_v33 = vadd.s32 4294967169, %v652_v61  ;;  %vm4191_vm9 = vweird.f32 %v3013_v9  ;;  %v336_v4 = vsel %vm329_vm5, %v332_v34, %v335_v58  ;;  %v466_v14 = vmul.f32 %v464_v45, %v464_v45 }
  0xec   : > { %v589_v27 = vadd.s32 1, %v585_v36  ;;  %v337_v42 = vsel %vm4191_vm9, nan, %v336_v4  ;;  %v482_v29 = vadd.s32 3, %v3323_v24  ;;  %v586_v49 = vmul.u32 %v3205_v16, %v532_v59 }
  0xed   : > { %v658_v54 = vadd.s32 1, %v2766_v33  ;;  %v467_v28 = vmul.f32 -0.001358992, %v466_v14  ;;  %v474_v35 = vmul.f32 -0.00019511016, %v466_v14  ;;  %v656_v13 = vor.u32 8388608, %v655_v3  ;;  %1423 = vst [vmem:[%s3353_s30] sm:$0xff] %v337_v42 }
  0xee   : > { %v590_v43 = vsel %vm588_vm8, %v589_v27, %v585_v36  ;;  %v483_v63 = vand.u32 3, %v482_v29  ;;  %v806_v46 = vand.u32 2139095040, %v3225_v37  ;;  %v3363_v19 = vadd.s32 %v582_v51, %v563_v18 }
  0xef   : > { %v591_v8 = vadd.s32 %v590_v43, %v586_v49  ;;  %vm659_vm10 = vcmp.gt.s32.totalorder %v658_v54, 0  ;;  %v468_v56 = vadd.f32 0.041655596, %v467_v28  ;;  %v475_v20 = vadd.f32 0.008332121, %v474_v35 }
  0xf0   : > { %v660_v57 = vsel %vm659_vm10, %v658_v54, 0  ;;  %v3356_v23 = vshll.u32 %v656_v13, 8  ;;  %vm485_vm11 = vcmp.eq.s32.totalorder %v483_v63, 0  ;;  %vm488_vm12 = vcmp.eq.s32.totalorder %v483_v63, 2 }
  0xf1   : > { %v592_v25 = vadd.s32 536870912, %v591_v8  ;;  %v662_v1 = vand.u32 31, %v660_v57  ;;  %v469_v5 = vmul.f32 %v468_v56, %v466_v14  ;;  %v476_v16 = vmul.f32 %v475_v20, %v466_v14 }
  0xf2   : > { %v4167_v52 = vand.u32 2147483647, %v3225_v37  ;;  %vm484_vm13 = vcmp.lt.s32.totalorder %v483_v63, 2  ;;  %v3368_v61 = vand.u32 65535, %v3356_v23  ;;  %v807_v31 = vshrl.u32 %v806_v46, 23 }
  0xf3   : > { %v3359_v39 = vshrl.u32 %v592_v25, 30  ;;  %v3361_v32 = vsub.s32 32, %v662_v1  ;;  %v470_v30 = vadd.f32 -0.4999988, %v469_v5  ;;  %v477_v41 = vadd.f32 -0.16666654, %v476_v16 }
  0xf4   : > { %vm4190_vm14 = vweird.f32 %v3016_v10  ;;  %v3373_v3 = vshrl.u32 %v660_v57, 5  ;;  %v665_v33 = vshll.u32 %v4184_v38, %v662_v1  ;;  %v668_v27 = vshll.u32 %v2929_v40, %v662_v1 }
  0xf5   : > { %v594_v21 = vshll.u32 %v3359_v39, 30  ;;  %v471_v62 = vmul.f32 %v470_v30, %v466_v14  ;;  %v478_v59 = vmul.f32 %v477_v41, %v466_v14  ;;  %v666_v18 = vshrl.u32 %v2929_v40, %v3361_v32 }
  0xf6   : > { %v669_v51 = vshrl.u32 %v4179_v44, %v3361_v32  ;;  %v675_v4 = vshrl.u32 %v4177_v50, %v3361_v32  ;;  %v672_v42 = vshrl.u32 %v4172_v47, %v3361_v32  ;;  %v671_v54 = vshll.u32 %v4179_v44, %v662_v1 }
  0xf7   : > { %v3371_v36 = vsub.s32 %v591_v8, %v594_v21  ;;  %v3379_v34 = vadd.f32 1.0, %v471_v62  ;;  %v479_v58 = vadd.f32 1.0, %v478_v59  ;;  %v674_v28 = vshll.u32 %v4172_v47, %v662_v1 }
  0xf8   : > { %v667_v43 = vor.u32 %v666_v18, %v665_v33  ;;  %v670_v13 = vor.u32 %v669_v51, %v668_v27  ;;  %v678_v8 = vshrl.u32 %v4176_v53, %v3361_v32  ;;  %v673_v25 = vor.u32 %v672_v42, %v671_v54 }
  0xf9   : > { %vm596_vm15 = vcmp.lt.s32.totalorder %v3371_v36, 0  ;;  %v597_v14 = vsub.s32 0, %v3371_v36  ;;  %v3389_v29 = vmul.f32 %v479_v58, %v464_v45  ;;  %v4165_v49 = vxor.u32 2147483648, %v3379_v34 }
  0xfa   : > { %v676_v57 = vor.u32 %v675_v4, %v674_v28  ;;  %v698_v45 = vshrl.u32 %v3356_v23, 16  ;;  %v677_v5 = vshll.u32 %v4177_v50, %v662_v1  ;;  %v3400_v16 = vadd.s32 4294967169, %v807_v31 }
  0xfb   : > { %v598_v35 = vsel %vm596_vm15, %v597_v14, %v3371_v36  ;;  %v4163_v56 = vxor.u32 2147483648, %v3389_v29  ;;  %v3404_v46 = vand.u32 8388607, %v4167_v52  ;;  %v490_v41 = vsel %vm488_vm12, %v4165_v49, %v3389_v29 }
  0xfc   : > { %v599_v20 = vclz %v598_v35  ;;  %vm495_vm0 = vcmp.lt.s32.totalorder %v3030_v26, 0  ;;  %vm680_vm1 = vcmp.lt.s32.totalorder %v3373_v3, 1  ;;  %v679_v62 = vor.u32 %v678_v8, %v677_v5 }
  0xfd   : > { %v487_v30 = vsel %vm485_vm11, %v3379_v34, %v4163_v56  ;;  %vm683_vm2 = vcmp.lt.s32.totalorder %v3373_v3, 4  ;;  %v688_v59 = vsel %vm680_vm1, %v667_v43, %v670_v13  ;;  %vm682_vm4 = vcmp.lt.s32.totalorder %v3373_v3, 3 }
  0xfe   : > { %v2764_v1 = vadd.s32 4294967294, %v599_v20  ;;  %v491_v21 = vsel %vm484_vm13, %v487_v30, %v490_v41  ;;  %v689_v18 = vsel %vm683_vm2, %v676_v57, 920167782  ;;  %v617_v58 = vsub.s32 4, %v3359_v39 }
  0xff   : > { %v492_v31 = vsel %vm4190_vm14, nan, %v491_v21  ;;  %vm681_vm5 = vcmp.lt.s32.totalorder %v3373_v3, 2  ;;  %v690_v63 = vsel %vm682_vm4, %v673_v25, %v689_v18  ;;  %v692_v27 = vsel %vm680_vm1, %v670_v13, %v673_v25 }
 0x100   : > { %vm2765_vm3 = vcmp.lt.s32.totalorder %v2764_v1, 0  ;;  %1424 = vst [vmem:[%s3353_s30 + $0x8] sm:$0xff] %v492_v31  ;;  %v691_v14 = vsel %vm681_vm5, %v688_v59, %v690_v63  ;;  %v664_v42 = vshrl.u32 %v4184_v38, %v3361_v32  ;;  %v693_v54 = vsel %vm683_vm2, %v679_v62, 1326507024 }
 0x101   : > { %v602_v51 = vsel %vm2765_vm3, 0, %v2764_v1  ;;  %v721_v28 = vand.u32 65535, %v691_v14  ;;  %v722_v35 = vshrl.u32 %v691_v14, 16  ;;  %vm3440_vm6 = vcmp.le.f32.partialorder %v493_v60, 0.7853982 }
 0x102   : > { %v603_v33 = vsub.s32 32, %v602_v51  ;;  %v607_v4 = vsub.s32 4294967266, %v602_v51  ;;  %v604_v20 = vshll.u32 %v3371_v36, %v602_v51  ;;  %v694_v41 = vsel %vm682_vm4, %v676_v57, %v693_v54 }
 0x103   : > { %v685_v32 = vsel %vm683_vm2, %v673_v25, 2102212464  ;;  %v695_v1 = vsel %vm681_vm5, %v692_v27, %v694_v41  ;;  %v724_v21 = vmul.u32 %v722_v35, %v3368_v61  ;;  %v725_v60 = vmul.u32 %v721_v28, %v698_v45 }
 0x104   : > { %v605_v5 = vshrl.u32 %v3363_v19, %v603_v33  ;;  %v608_v30 = vadd.s32 127, %v607_v4  ;;  %v699_v31 = vand.u32 65535, %v695_v1  ;;  %v700_v18 = vshrl.u32 %v695_v1, 16 }
 0x105   : > { %v618_v19 = vsel %vm495_vm0, %v617_v58, %v3359_v39  ;;  %v684_v36 = vsel %vm680_vm1, %v664_v42, %v667_v43  ;;  %v723_v57 = vmul.u32 %v721_v28, %v3368_v61  ;;  %v727_v25 = vshll.u32 %v724_v21, 16 }
 0x106   : > { %v606_v62 = vor.u32 %v605_v5, %v604_v20  ;;  %v609_v59 = vshll.u32 %v608_v30, 23  ;;  %v686_v63 = vsel %vm682_vm4, %v670_v13, %v685_v32  ;;  %v702_v33 = vmul.u32 %v700_v18, %v3368_v61 }
 0x107   : > { %v726_v4 = vmul.u32 %v722_v35, %v698_v45  ;;  %v703_v27 = vmul.u32 %v699_v31, %v698_v45  ;;  %v729_v54 = vshll.u32 %v725_v60, 16  ;;  %vm731_vm7 = vc.u32 %v723_v57, %v727_v25 }
 0x108   : > { %v610_v51 = vor.u32 4788187, %v609_v59  ;;  %v613_v14 = vcvt.s32.f32 %v606_v62  ;;  %v701_v39 = vmul.u32 %v699_v31, %v3368_v61  ;;  %v705_v58 = vshll.u32 %v702_v33, 16 }
 0x109   : > { %v732_v43 = vsel %vm731_vm7, 1, %v2927_v0  ;;  %v704_v42 = vmul.u32 %v700_v18, %v698_v45  ;;  %v707_v28 = vshll.u32 %v703_v27, 16  ;;  %v733_v5 = vadd.s32 %v727_v25, %v723_v57 }
 0x10a   : > { %v611_v20 = vand.u32 2147483647, %v610_v51  ;;  %v734_v30 = vadd.s32 %v732_v43, %v726_v4  ;;  %vm709_vm8 = vc.u32 %v701_v39, %v705_v58  ;;  %v711_v13 = vadd.s32 %v705_v58, %v701_v39 }
 0x10b   : > { %v813_v32 = vadd.s32 1, %v3400_v16  ;;  %v3467_v35 = vsel %vm3440_vm6, 0, %v618_v19  ;;  %v687_v1 = vsel %vm681_vm5, %v684_v36, %v686_v63  ;;  %v710_v61 = vsel %vm709_vm8, 1, %v2927_v0 }
 0x10c   : > { %v614_v41 = vmul.f32 %v613_v14, %v611_v20  ;;  %vm735_vm10 = vc.u32 %v733_v5, %v729_v54  ;;  %v712_v45 = vadd.s32 %v710_v61, %v704_v42  ;;  %vm713_vm11 = vc.u32 %v711_v13, %v707_v28 }
 0x10d   : > { %v736_v59 = vsel %vm735_vm10, 1, %v2927_v0  ;;  %v714_v31 = vsel %vm713_vm11, 1, %v2927_v0  ;;  %v728_v18 = vshrl.u32 %v724_v21, 16  ;;  %vm814_vm12 = vcmp.gt.s32.totalorder %v813_v32, 0 }
 0x10e   : > { %v615_v62 = vxor.u32 2147483648, %v614_v41  ;;  %v738_v57 = vadd.s32 %v736_v59, %v734_v30  ;;  %v706_v19 = vshrl.u32 %v702_v33, 16  ;;  %v716_v25 = vadd.s32 %v714_v31, %v712_v45 }
 0x10f   : > { %v815_v3 = vsel %vm814_vm12, %v813_v32, 0  ;;  %v730_v51 = vshrl.u32 %v725_v60, 16  ;;  %v637_v20 = vadd.s32 3, %v3467_v35  ;;  %v708_v39 = vshrl.u32 %v703_v27, 16 }
 0x110   : > { %v616_v16 = vsel %vm495_vm0, %v615_v62, %v614_v41  ;;  %v739_v63 = vadd.s32 %v738_v57, %v728_v18  ;;  %v817_v4 = vand.u32 31, %v815_v3  ;;  %v717_v21 = vadd.s32 %v716_v25, %v706_v19 }
 0x111   : > { %v619_v36 = vsel %vm3440_vm6, %v3030_v26, %v616_v16  ;;  %v741_v43 = vmul.u32 %v3356_v23, %v687_v1  ;;  %v811_v42 = vor.u32 8388608, %v3404_v46  ;;  %v3486_v8 = vadd.s32 %v733_v5, %v729_v54 }
 0x112   : > { %v621_v14 = vmul.f32 %v619_v36, %v619_v36  ;;  %v740_v58 = vadd.s32 %v739_v63, %v730_v51  ;;  %v3482_v33 = vsub.s32 32, %v817_v4  ;;  %v3484_v41 = vadd.s32 %v717_v21, %v708_v39 }
 0x113   : > { %v3488_v13 = vshrl.u32 %v815_v3, 5  ;;  %v820_v32 = vshll.u32 %v4184_v38, %v817_v4  ;;  %v823_v54 = vshll.u32 %v2929_v40, %v817_v4  ;;  %v826_v5 = vshll.u32 %v4179_v44, %v817_v4 }
 0x114   : > { %v622_v28 = vmul.f32 -0.001358992, %v621_v14  ;;  %v629_v30 = vmul.f32 -0.00019511016, %v621_v14  ;;  %v744_v60 = vadd.s32 1, %v740_v58  ;;  %v821_v27 = vshrl.u32 %v2929_v40, %v3482_v33 }
 0x115   : > { %vm743_vm13 = vc.u32 %v3484_v41, %v3486_v8  ;;  %v824_v46 = vshrl.u32 %v4179_v44, %v3482_v33  ;;  %v827_v62 = vshrl.u32 %v4172_v47, %v3482_v33  ;;  %v829_v57 = vshll.u32 %v4172_v47, %v817_v4 }
 0x116   : > { %v623_v61 = vadd.f32 0.041655596, %v622_v28  ;;  %v630_v23 = vadd.f32 0.008332121, %v629_v30  ;;  %v745_v1 = vsel %vm743_vm13, %v744_v60, %v740_v58  ;;  %v3501_v18 = vor.u32 %v821_v27, %v820_v32 }
 0x117   : > { %v746_v31 = vadd.s32 %v745_v1, %v741_v43  ;;  %v830_v16 = vshrl.u32 %v4177_v50, %v3482_v33  ;;  %v832_v19 = vshll.u32 %v4177_v50, %v817_v4  ;;  %v833_v25 = vshrl.u32 %v4176_v53, %v3482_v33 }
 0x118   : > { %v624_v45 = vmul.f32 %v623_v61, %v621_v14  ;;  %v631_v59 = vmul.f32 %v630_v23, %v621_v14  ;;  %v3509_v39 = vor.u32 %v824_v46, %v823_v54  ;;  %v638_v21 = vand.u32 3, %v637_v20 }
 0x119   : > { %v747_v63 = vadd.s32 536870912, %v746_v31  ;;  %v828_v58 = vor.u32 %v827_v62, %v826_v5  ;;  %v831_v43 = vor.u32 %v830_v16, %v829_v57  ;;  %v834_v28 = vor.u32 %v833_v25, %v832_v19 }
 0x11a   : > { %v625_v3 = vadd.f32 -0.4999988, %v624_v45  ;;  %v632_v51 = vadd.f32 -0.16666654, %v631_v59  ;;  %vm838_vm15 = vcmp.lt.s32.totalorder %v3488_v13, 4  ;;  %vm835_vm0 = vcmp.lt.s32.totalorder %v3488_v13, 1 }
 0x11b   : > { %v3511_v32 = vshrl.u32 %v747_v63, 30  ;;  %vm837_vm1 = vcmp.lt.s32.totalorder %v3488_v13, 3  ;;  %v844_v4 = vsel %vm838_vm15, %v831_v43, 920167782  ;;  %v3518_v27 = vshll.u32 %v811_v42, 8 }
 0x11c   : > { %v626_v30 = vmul.f32 %v625_v3, %v621_v14  ;;  %v633_v60 = vmul.f32 %v632_v51, %v621_v14  ;;  %v843_v14 = vsel %vm835_vm0, %v3501_v18, %v3509_v39  ;;  %vm639_vm2 = vcmp.lt.s32.totalorder %v638_v21, 2  ;;  %v3550_v51 = vpop.permute.xlu1 %167 }
 0x11d   : > { %v749_v23 = vshll.u32 %v3511_v32, 30  ;;  %vm836_vm3 = vcmp.lt.s32.totalorder %v3488_v13, 2  ;;  %v845_v46 = vsel %vm837_vm1, %v828_v58, %v844_v4  ;;  %v848_v42 = vsel %vm838_vm15, %v834_v28, 1326507024 }
 0x11e   : > { %v3520_v61 = vadd.f32 1.0, %v626_v30  ;;  %v634_v20 = vadd.f32 1.0, %v633_v60  ;;  %v847_v62 = vsel %vm835_vm0, %v3509_v39, %v828_v58  ;;  %vm640_vm4 = vcmp.eq.s32.totalorder %v638_v21, 0 }
 0x11f   : > { %v750_v5 = vsub.s32 %v746_v31, %v749_v23  ;;  %vm643_vm5 = vcmp.eq.s32.totalorder %v638_v21, 2  ;;  %v846_v45 = vsel %vm836_vm3, %v843_v14, %v845_v46  ;;  %v849_v59 = vsel %vm837_vm1, %v831_v43, %v848_v42 }
 0x120   : > { %v3532_v1 = vmul.f32 %v634_v20, %v619_v36  ;;  %v4161_v54 = vxor.u32 2147483648, %v3520_v61  ;;  %v852_v16 = vand.u32 65535, %v3518_v27  ;;  %v850_v19 = vsel %vm836_vm3, %v847_v62, %v849_v59 }
 0x121   : > { %vm751_vm6 = vcmp.lt.s32.totalorder %v750_v5, 0  ;;  %v752_v36 = vsub.s32 0, %v750_v5  ;;  %v853_v25 = vshrl.u32 %v3518_v27, 16  ;;  %v876_v3 = vand.u32 65535, %v846_v45 }
 0x122   : > { %v4162_v57 = vxor.u32 2147483648, %v3532_v1  ;;  %v645_v31 = vsel %vm643_vm5, %v4161_v54, %v3532_v1  ;;  %v854_v28 = vand.u32 65535, %v850_v19  ;;  %v855_v30 = vshrl.u32 %v850_v19, 16 }
 0x123   : > { %v753_v43 = vsel %vm751_vm6, %v752_v36, %v750_v5  ;;  %vm4186_vm7 = vweird.f32 %v3030_v26  ;;  %v877_v20 = vshrl.u32 %v846_v45, 16  ;;  %v3559_v23 = vmul.f32 %v3010_v7, %v3211_v22 }
 0x124   : > { %v642_v63 = vsel %vm640_vm4, %v3520_v61, %v4162_v57  ;;  %v754_v4 = vclz %v753_v43  ;;  %v857_v46 = vmul.u32 %v855_v30, %v852_v16  ;;  %v858_v42 = vmul.u32 %v854_v28, %v853_v25 }
 0x125   : > { %v646_v60 = vsel %vm639_vm2, %v642_v63, %v645_v31  ;;  %v3565_v62 = vmul.f32 %v3008_v6, %v3550_v51  ;;  %v742_v59 = vadd.s32 %v3486_v8, %v3484_v41  ;;  %v819_v45 = vshrl.u32 %v4184_v38, %v3482_v33 }
 0x126   : > { %v647_v14 = vsel %vm4186_vm7, nan, %v646_v60  ;;  %v2767_v21 = vadd.s32 4294967294, %v754_v4  ;;  %v840_v22 = vsel %vm838_vm15, %v828_v58, 2102212464  ;;  %v856_v36 = vmul.u32 %v854_v28, %v852_v16 }
 0x127   : > { %1425 = vst [vmem:[%s3353_s30 + $0x20] sm:$0xff] %v647_v14  ;;  %v860_v31 = vshll.u32 %v857_v46, 16  ;;  %v878_v19 = vmul.u32 %v876_v3, %v852_v16  ;;  %v859_v63 = vmul.u32 %v855_v30, %v853_v25  ;;  %v862_v43 = vshll.u32 %v858_v42, 16 }
 0x128   : > { %vm2768_vm8 = vcmp.lt.s32.totalorder %v2767_v21, 0  ;;  %v879_v60 = vmul.u32 %v877_v20, %v852_v16  ;;  %vm650_vm10 = vcmp.lt.s32.totalorder %v3221_v55, 0  ;;  %v880_v8 = vmul.u32 %v876_v3, %v853_v25 }
 0x129   : > { %v757_v6 = vsel %vm2768_vm8, 0, %v2767_v21  ;;  %vm864_vm11 = vc.u32 %v856_v36, %v860_v31  ;;  %v866_v41 = vadd.s32 %v860_v31, %v856_v36  ;;  %v861_v33 = vshrl.u32 %v857_v46, 16 }
 0x12a   : > { %v758_v4 = vsub.s32 32, %v757_v6  ;;  %v762_v54 = vsub.s32 4294967266, %v757_v6  ;;  %v865_v14 = vsel %vm864_vm11, 1, %v2927_v0  ;;  %v881_v58 = vmul.u32 %v877_v20, %v853_v25 }
 0x12b   : > { %v867_v57 = vadd.s32 %v865_v14, %v859_v63  ;;  %vm868_vm12 = vc.u32 %v866_v41, %v862_v43  ;;  %v882_v28 = vshll.u32 %v879_v60, 16  ;;  %v759_v56 = vshll.u32 %v750_v5, %v757_v6 }
 0x12c   : > { %v760_v12 = vshrl.u32 %v742_v59, %v758_v4  ;;  %v763_v30 = vadd.s32 127, %v762_v54  ;;  %v869_v16 = vsel %vm868_vm12, 1, %v2927_v0  ;;  %v884_v11 = vshll.u32 %v880_v8, 16 }
 0x12d   : > { %v871_v49 = vadd.s32 %v869_v16, %v867_v57  ;;  %vm886_vm13 = vc.u32 %v878_v19, %v882_v28  ;;  %v888_v21 = vadd.s32 %v882_v28, %v878_v19  ;;  %v772_v31 = vsub.s32 4, %v3511_v32 }
 0x12e   : > { %v761_v36 = vor.u32 %v760_v12, %v759_v56  ;;  %v764_v3 = vshll.u32 %v763_v30, 23  ;;  %v887_v46 = vsel %vm886_vm13, 1, %v2927_v0  ;;  %v4168_v25 = vand.u32 2147483647, %v3559_v23 }
 0x12f   : > { %v872_v52 = vadd.s32 %v871_v49, %v861_v33  ;;  %v889_v63 = vadd.s32 %v887_v46, %v881_v58  ;;  %vm890_vm15 = vc.u32 %v888_v21, %v884_v11  ;;  %v839_v54 = vsel %vm835_vm0, %v819_v45, %v3501_v18 }
 0x130   : > { %v765_v5 = vor.u32 4788187, %v764_v3  ;;  %v863_v57 = vshrl.u32 %v858_v42, 16  ;;  %v891_v20 = vsel %vm890_vm15, 1, %v2927_v0  ;;  %v841_v12 = vsel %vm837_vm1, %v3509_v39, %v840_v22 }
 0x131   : > { %v883_v56 = vshrl.u32 %v879_v60, 16  ;;  %v893_v59 = vadd.s32 %v891_v20, %v889_v63  ;;  %v961_v49 = vand.u32 2139095040, %v3559_v23  ;;  %v768_v43 = vcvt.s32.f32 %v761_v36 }
 0x132   : > { %v766_v19 = vand.u32 2147483647, %v765_v5  ;;  %v773_v6 = vsel %vm650_vm10, %v772_v31, %v3511_v32  ;;  %v873_v41 = vadd.s32 %v872_v52, %v863_v57  ;;  %v885_v4 = vshrl.u32 %v880_v8, 16 }
 0x133   : > { %v894_v18 = vadd.s32 %v893_v59, %v883_v56  ;;  %v962_v42 = vshrl.u32 %v961_v49, 23  ;;  %v965_v45 = vand.u32 8388607, %v4168_v25  ;;  %v892_v14 = vadd.s32 %v888_v21, %v884_v11 }
 0x134   : > { %v769_v33 = vmul.f32 %v768_v43, %v766_v19  ;;  %vm649_vm0 = vcmp.le.f32.partialorder %v648_v48, 0.7853982  ;;  %v842_v39 = vsel %vm836_vm3, %v839_v54, %v841_v12  ;;  %v1116_v30 = vand.u32 2139095040, %v3565_v62 }
 0x135   : > { %v895_v22 = vadd.s32 %v894_v18, %v885_v4  ;;  %v2772_v60 = vadd.s32 4294967169, %v962_v42  ;;  %v3597_v28 = vsel %vm649_vm0, 0, %v773_v6  ;;  %vm898_vm1 = vc.u32 %v873_v41, %v892_v14 }
 0x136   : > { %v770_v58 = vxor.u32 2147483648, %v769_v33  ;;  %v966_v32 = vor.u32 8388608, %v965_v45  ;;  %v896_v16 = vmul.u32 %v3518_v27, %v842_v39  ;;  %v792_v36 = vadd.s32 3, %v3597_v28 }
 0x137   : > { %v899_v52 = vadd.s32 1, %v895_v22  ;;  %v968_v8 = vadd.s32 1, %v2772_v60  ;;  %v1117_v5 = vshrl.u32 %v1116_v30, 23  ;;  %v3611_v19 = vadd.s32 %v892_v14, %v873_v41 }
 0x138   : > { %v771_v11 = vsel %vm650_vm10, %v770_v58, %v769_v33  ;;  %v3605_v63 = vshll.u32 %v966_v32, 8  ;;  %v3609_v59 = vand.u32 3, %v792_v36  ;;  %v4171_v6 = vand.u32 2147483647, %v3565_v62 }
 0x139   : > { %v774_v48 = vsel %vm649_vm0, %v3221_v55, %v771_v11  ;;  %v900_v13 = vsel %vm898_vm1, %v899_v52, %v895_v22  ;;  %vm969_vm2 = vcmp.gt.s32.totalorder %v968_v8, 0  ;;  %v2775_v4 = vadd.s32 4294967169, %v1117_v5 }
 0x13a   : > { %v776_v21 = vmul.f32 %v774_v48, %v774_v48  ;;  %v901_v3 = vadd.s32 %v900_v13, %v896_v16  ;;  %v970_v31 = vsel %vm969_vm2, %v968_v8, 0  ;;  %v3614_v43 = vand.u32 65535, %v3605_v63 }
 0x13b   : > { %v972_v46 = vand.u32 31, %v970_v31  ;;  %vm805_vm3 = vcmp.lt.s32.totalorder %v3225_v37, 0  ;;  %v3618_v33 = vshrl.u32 %v970_v31, 5  ;;  %vm798_vm4 = vcmp.eq.s32.totalorder %v3609_v59, 2 }
 0x13c   : > { %v777_v54 = vmul.f32 -0.001358992, %v776_v21  ;;  %v784_v57 = vmul.f32 -0.00019511016, %v776_v21  ;;  %v902_v20 = vadd.s32 536870912, %v901_v3  ;;  %vm795_vm5 = vcmp.eq.s32.totalorder %v3609_v59, 0 }
 0x13d   : > { %v3607_v12 = vsub.s32 32, %v972_v46  ;;  %v975_v39 = vshll.u32 %v4184_v38, %v972_v46  ;;  %v978_v32 = vshll.u32 %v2929_v40, %v972_v46  ;;  %v981_v8 = vshll.u32 %v4179_v44, %v972_v46 }
 0x13e   : > { %v778_v56 = vadd.f32 0.041655596, %v777_v54  ;;  %v785_v27 = vadd.f32 0.008332121, %v784_v57  ;;  %v903_v49 = vshrl.u32 %v902_v20, 30  ;;  %v984_v11 = vshll.u32 %v4172_v47, %v972_v46 }
 0x13f   : > { %v976_v22 = vshrl.u32 %v2929_v40, %v3607_v12  ;;  %v979_v41 = vshrl.u32 %v4179_v44, %v3607_v12  ;;  %v985_v14 = vshrl.u32 %v4177_v50, %v3607_v12  ;;  %v982_v30 = vshrl.u32 %v4172_v47, %v3607_v12 }
 0x140   : > { %v779_v18 = vmul.f32 %v778_v56, %v776_v21  ;;  %v786_v42 = vmul.f32 %v785_v27, %v776_v21  ;;  %v904_v45 = vshll.u32 %v903_v49, 30  ;;  %v988_v16 = vshrl.u32 %v4176_v53, %v3607_v12 }
 0x141   : > { %vm794_vm6 = vcmp.lt.s32.totalorder %v3609_v59, 2  ;;  %vm4185_vm10 = vweird.f32 %v3221_v55  ;;  %v927_v31 = vsub.s32 4, %v903_v49  ;;  %v977_v5 = vor.u32 %v976_v22, %v975_v39 }
 0x142   : > { %v780_v60 = vadd.f32 -0.4999988, %v779_v18  ;;  %v787_v58 = vadd.f32 -0.16666654, %v786_v42  ;;  %v3628_v52 = vsub.s32 %v901_v3, %v904_v45  ;;  %v980_v54 = vor.u32 %v979_v41, %v978_v32 }
 0x143   : > { %v986_v57 = vor.u32 %v985_v14, %v984_v11  ;;  %v987_v18 = vshll.u32 %v4177_v50, %v972_v46  ;;  %v983_v42 = vor.u32 %v982_v30, %v981_v8  ;;  %v1008_v45 = vshrl.u32 %v3605_v63, 16 }
 0x144   : > { %v781_v13 = vmul.f32 %v780_v60, %v776_v21  ;;  %v788_v36 = vmul.f32 %v787_v58, %v776_v21  ;;  %vm906_vm8 = vcmp.lt.s32.totalorder %v3628_v52, 0  ;;  %v907_v3 = vsub.s32 0, %v3628_v52 }
 0x145   : > { %v3647_v60 = vadd.s32 1, %v2775_v4  ;;  %v4200_v39 = vand.u32 2147483647, %v3225_v37  ;;  %v989_v41 = vor.u32 %v988_v16, %v987_v18  ;;  %vm990_vm12 = vcmp.lt.s32.totalorder %v3618_v33, 1 }
 0x146   : > { %v3642_v20 = vadd.f32 1.0, %v781_v13  ;;  %v789_v56 = vadd.f32 1.0, %v788_v36  ;;  %v908_v27 = vsel %vm906_vm8, %v907_v3, %v3628_v52  ;;  %v928_v14 = vsel %vm805_vm3, %v927_v31, %v903_v49 }
 0x147   : > { %v909_v21 = vclz %v908_v27  ;;  %vm3654_vm11 = vcmp.le.f32.partialorder %v4200_v39, 0.7853982  ;;  %vm993_vm13 = vcmp.lt.s32.totalorder %v3618_v33, 4  ;;  %vm991_vm15 = vcmp.lt.s32.totalorder %v3618_v33, 2 }
 0x148   : > { %v3649_v58 = vmul.f32 %v789_v56, %v774_v48  ;;  %v4169_v25 = vxor.u32 2147483648, %v3642_v20  ;;  %v998_v48 = vsel %vm990_vm12, %v977_v5, %v980_v54  ;;  %vm992_vm0 = vcmp.lt.s32.totalorder %v3618_v33, 3 }
 0x149   : > { %v2770_v46 = vadd.s32 4294967294, %v909_v21  ;;  %v999_v32 = vsel %vm993_vm13, %v986_v57, 920167782  ;;  %v1002_v30 = vsel %vm990_vm12, %v980_v54, %v983_v42  ;;  %v1003_v36 = vsel %vm993_vm13, %v989_v41, 1326507024 }
 0x14a   : > { %v4170_v4 = vxor.u32 2147483648, %v3649_v58  ;;  %v800_v49 = vsel %vm798_vm4, %v4169_v25, %v3649_v58  ;;  %v1000_v8 = vsel %vm992_vm0, %v983_v42, %v999_v32  ;;  %v995_v27 = vsel %vm993_vm13, %v983_v42, 2102212464 }
 0x14b   : > { %vm2771_vm1 = vcmp.lt.s32.totalorder %v2770_v46, 0  ;;  %v1001_v13 = vsel %vm991_vm15, %v998_v48, %v1000_v8  ;;  %v1004_v21 = vsel %vm992_vm0, %v986_v57, %v1003_v36  ;;  %v974_v42 = vshrl.u32 %v4184_v38, %v3607_v12 }
 0x14c   : > { %v797_v11 = vsel %vm795_vm5, %v3642_v20, %v4170_v4  ;;  %v912_v16 = vsel %vm2771_vm1, 0, %v2770_v46  ;;  %v1031_v39 = vand.u32 65535, %v1001_v13  ;;  %v1032_v46 = vshrl.u32 %v1001_v13, 16 }
 0x14d   : > { %v801_v3 = vsel %vm794_vm6, %v797_v11, %v800_v49  ;;  %v913_v31 = vsub.s32 32, %v912_v16  ;;  %v917_v56 = vsub.s32 4294967266, %v912_v16  ;;  %v914_v48 = vshll.u32 %v3628_v52, %v912_v16 }
 0x14e   : > { %v802_v18 = vsel %vm4185_vm10, nan, %v801_v3  ;;  %v1005_v59 = vsel %vm991_vm15, %v1002_v30, %v1004_v21  ;;  %v1034_v11 = vmul.u32 %v1032_v46, %v3614_v43  ;;  %v3705_v13 = vsel %vm3654_vm11, 0, %v928_v14 }
 0x14f   : > { %v915_v41 = vshrl.u32 %v3611_v19, %v913_v31  ;;  %v918_v32 = vadd.s32 127, %v917_v56  ;;  %1426 = vst [vmem:[%s3353_s30 + $0x28] sm:$0xff] %v802_v18  ;;  %v1009_v49 = vand.u32 65535, %v1005_v59  ;;  %v1010_v8 = vshrl.u32 %v1005_v59, 16 }
 0x150   : > { %v1035_v52 = vmul.u32 %v1031_v39, %v1008_v45  ;;  %v994_v19 = vsel %vm990_vm12, %v974_v42, %v977_v5  ;;  %v996_v30 = vsel %vm992_vm0, %v980_v54, %v995_v27  ;;  %v1033_v31 = vmul.u32 %v1031_v39, %v3614_v43 }
 0x151   : > { %v916_v3 = vor.u32 %v915_v41, %v914_v48  ;;  %v919_v57 = vshll.u32 %v918_v32, 23  ;;  %v1012_v16 = vmul.u32 %v1010_v8, %v3614_v43  ;;  %v1013_v12 = vmul.u32 %v1009_v49, %v1008_v45 }
 0x152   : > { %v1036_v56 = vmul.u32 %v1032_v46, %v1008_v45  ;;  %v1037_v18 = vshll.u32 %v1034_v11, 16  ;;  %v1011_v48 = vmul.u32 %v1009_v49, %v3614_v43  ;;  %v1014_v14 = vmul.u32 %v1010_v8, %v1008_v45 }
 0x153   : > { %v920_v36 = vor.u32 4788187, %v919_v57  ;;  %v923_v21 = vcvt.s32.f32 %v916_v3  ;;  %v1015_v41 = vshll.u32 %v1012_v16, 16  ;;  %v1017_v59 = vshll.u32 %v1013_v12, 16 }
 0x154   : > { %v1039_v25 = vshll.u32 %v1035_v52, 16  ;;  %vm1041_vm2 = vc.u32 %v1033_v31, %v1037_v18  ;;  %v1043_v27 = vadd.s32 %v1037_v18, %v1033_v31  ;;  %vm1124_vm5 = vcmp.gt.s32.totalorder %v3647_v60, 0 }
 0x155   : > { %v921_v32 = vand.u32 2147483647, %v920_v36  ;;  %vm1019_vm4 = vc.u32 %v1011_v48, %v1015_v41  ;;  %v1021_v5 = vadd.s32 %v1015_v41, %v1011_v48  ;;  %v1042_v54 = vsel %vm1041_vm2, 1, %v2927_v0 }
 0x156   : > { %v1020_v57 = vsel %vm1019_vm4, 1, %v2927_v0  ;;  %v1044_v39 = vadd.s32 %v1042_v54, %v1036_v56  ;;  %v1038_v43 = vshrl.u32 %v1034_v11, 16  ;;  %vm1045_vm8 = vc.u32 %v1043_v27, %v1039_v25 }
 0x157   : > { %v924_v42 = vmul.f32 %v923_v21, %v921_v32  ;;  %v1022_v46 = vadd.s32 %v1020_v57, %v1014_v14  ;;  %vm1023_vm6 = vc.u32 %v1021_v5, %v1017_v59  ;;  %v1046_v8 = vsel %vm1045_vm8, 1, %v2927_v0 }
 0x158   : > { %v1024_v49 = vsel %vm1023_vm6, 1, %v2927_v0  ;;  %v1125_v3 = vsel %vm1124_vm5, %v3647_v60, 0  ;;  %v1016_v36 = vshrl.u32 %v1012_v16, 16  ;;  %v1048_v31 = vadd.s32 %v1046_v8, %v1044_v39 }
 0x159   : > { %v925_v45 = vxor.u32 2147483648, %v924_v42  ;;  %v1026_v48 = vadd.s32 %v1024_v49, %v1022_v46  ;;  %v1127_v18 = vand.u32 31, %v1125_v3  ;;  %v997_v21 = vsel %vm991_vm15, %v994_v19, %v996_v30 }
 0x15a   : > { %v1018_v14 = vshrl.u32 %v1013_v12, 16  ;;  %v1040_v11 = vshrl.u32 %v1035_v52, 16  ;;  %v1049_v59 = vadd.s32 %v1048_v31, %v1038_v43  ;;  %v947_v16 = vadd.s32 3, %v3705_v13 }
 0x15b   : > { %v926_v56 = vsel %vm805_vm3, %v925_v45, %v924_v42  ;;  %v1027_v32 = vadd.s32 %v1026_v48, %v1016_v36  ;;  %v3727_v5 = vsub.s32 32, %v1127_v18  ;;  %v1120_v54 = vand.u32 8388607, %v4171_v6 }
 0x15c   : > { %v929_v41 = vsel %vm3654_vm11, %v3225_v37, %v926_v56  ;;  %v3734_v33 = vadd.s32 %v1043_v27, %v1039_v25  ;;  %v1050_v19 = vadd.s32 %v1049_v59, %v1040_v11  ;;  %v1051_v52 = vmul.u32 %v3605_v63, %v997_v21 }
 0x15d   : > { %v931_v60 = vmul.f32 %v929_v41, %v929_v41  ;;  %v3732_v42 = vadd.s32 %v1027_v32, %v1018_v14  ;;  %v3737_v12 = vshrl.u32 %v1125_v3, 5  ;;  %v1133_v57 = vshll.u32 %v2929_v40, %v1127_v18 }
 0x15e   : > { %v1054_v39 = vadd.s32 1, %v1050_v19  ;;  %v1134_v46 = vshrl.u32 %v4179_v44, %v3727_v5  ;;  %v1137_v25 = vshrl.u32 %v4172_v47, %v3727_v5  ;;  %v1131_v63 = vshrl.u32 %v2929_v40, %v3727_v5 }
 0x15f   : > { %v932_v30 = vmul.f32 -0.001358992, %v931_v60  ;;  %v939_v22 = vmul.f32 -0.00019511016, %v931_v60  ;;  %vm1053_vm3 = vc.u32 %v3732_v42, %v3734_v33  ;;  %v1136_v45 = vshll.u32 %v4179_v44, %v1127_v18 }
 0x160   : > { %v1055_v49 = vsel %vm1053_vm3, %v1054_v39, %v1050_v19  ;;  %v1139_v8 = vshll.u32 %v4172_v47, %v1127_v18  ;;  %v1140_v3 = vshrl.u32 %v4177_v50, %v3727_v5  ;;  %v1142_v36 = vshll.u32 %v4177_v50, %v1127_v18 }
 0x161   : > { %v933_v27 = vadd.f32 0.041655596, %v932_v30  ;;  %v940_v43 = vadd.f32 0.008332121, %v939_v22  ;;  %v1056_v56 = vadd.s32 %v1055_v49, %v1051_v52  ;;  %v1143_v21 = vshrl.u32 %v4176_v53, %v3727_v5 }
 0x162   : > { %v1130_v14 = vshll.u32 %v4184_v38, %v1127_v18  ;;  %v3756_v11 = vor.u32 %v1134_v46, %v1133_v57  ;;  %v3758_v32 = vor.u32 %v1137_v25, %v1136_v45  ;;  %v1141_v59 = vor.u32 %v1140_v3, %v1139_v8 }
 0x163   : > { %v934_v48 = vmul.f32 %v933_v27, %v931_v60  ;;  %v941_v31 = vmul.f32 %v940_v43, %v931_v60  ;;  %v1057_v22 = vadd.s32 536870912, %v1056_v56  ;;  %v1144_v39 = vor.u32 %v1143_v21, %v1142_v36 }
 0x164   : > { %v948_v4 = vand.u32 3, %v947_v16  ;;  %v1121_v6 = vor.u32 8388608, %v1120_v54  ;;  %v3760_v47 = vor.u32 %v1131_v63, %v1130_v14  ;;  %vm1148_vm11 = vcmp.lt.s32.totalorder %v3737_v12, 4 }
 0x165   : > { %v935_v19 = vadd.f32 -0.4999988, %v934_v48  ;;  %v942_v30 = vadd.f32 -0.16666654, %v941_v31  ;;  %v3762_v43 = vshrl.u32 %v1057_v22, 30  ;;  %vm1145_vm12 = vcmp.lt.s32.totalorder %v3737_v12, 1 }
 0x166   : > { %vm1147_vm13 = vcmp.lt.s32.totalorder %v3737_v12, 3  ;;  %v1154_v18 = vsel %vm1148_vm11, %v1141_v59, 920167782  ;;  %v1158_v57 = vsel %vm1148_vm11, %v1144_v39, 1326507024  ;;  %v1153_v25 = vsel %vm1145_vm12, %v3760_v47, %v3756_v11 }
 0x167   : > { %v936_v27 = vmul.f32 %v935_v19, %v931_v60  ;;  %v943_v52 = vmul.f32 %v942_v30, %v931_v60  ;;  %v1059_v46 = vshll.u32 %v3762_v43, 30  ;;  %v1157_v60 = vsel %vm1145_vm12, %v3756_v11, %v3758_v32 }
 0x168   : > { %v1155_v63 = vsel %vm1147_vm13, %v3758_v32, %v1154_v18  ;;  %v1159_v45 = vsel %vm1147_vm13, %v1141_v59, %v1158_v57  ;;  %v3787_v49 = vshll.u32 %v1121_v6, 8  ;;  %vm1146_vm15 = vcmp.lt.s32.totalorder %v3737_v12, 2 }
 0x169   : > { %v3771_v16 = vadd.f32 1.0, %v936_v27  ;;  %v944_v54 = vadd.f32 1.0, %v943_v52  ;;  %v1060_v36 = vsub.s32 %v1056_v56, %v1059_v46  ;;  %vm949_vm0 = vcmp.lt.s32.totalorder %v948_v4, 2 }
 0x16a   : > { %vm950_vm1 = vcmp.eq.s32.totalorder %v948_v4, 0  ;;  %v1160_v48 = vsel %vm1146_vm15, %v1157_v60, %v1159_v45  ;;  %v1156_v6 = vsel %vm1146_vm15, %v1153_v25, %v1155_v63  ;;  %vm953_vm4 = vcmp.eq.s32.totalorder %v948_v4, 2 }
 0x16b   : > { %v3789_v8 = vmul.f32 %v944_v54, %v929_v41  ;;  %v4175_v3 = vxor.u32 2147483648, %v3771_v16  ;;  %vm1061_vm2 = vcmp.lt.s32.totalorder %v1060_v36, 0  ;;  %v1062_v21 = vsub.s32 0, %v1060_v36 }
 0x16c   : > { %v1162_v41 = vand.u32 65535, %v3787_v49  ;;  %v1164_v14 = vand.u32 65535, %v1160_v48  ;;  %v1165_v59 = vshrl.u32 %v1160_v48, 16  ;;  %v1163_v22 = vshrl.u32 %v3787_v49, 16 }
 0x16d   : > { %v4174_v31 = vxor.u32 2147483648, %v3789_v8  ;;  %v955_v19 = vsel %vm953_vm4, %v4175_v3, %v3789_v8  ;;  %v1063_v30 = vsel %vm1061_vm2, %v1062_v21, %v1060_v36  ;;  %vm4189_vm5 = vweird.f32 %v3225_v37 }
 0x16e   : > { %v1064_v27 = vclz %v1063_v30  ;;  %v1187_v52 = vshrl.u32 %v1156_v6, 16  ;;  %v1167_v57 = vmul.u32 %v1165_v59, %v1162_v41  ;;  %v1168_v54 = vmul.u32 %v1164_v14, %v1163_v22 }
 0x16f   : > { %v952_v56 = vsel %vm950_vm1, %v3771_v16, %v4174_v31  ;;  %v1186_v46 = vand.u32 65535, %v1156_v6  ;;  %v3812_v60 = vmul.f32 %v3010_v7, %v3550_v51  ;;  %v1129_v63 = vshrl.u32 %v4184_v38, %v3727_v5 }
 0x170   : > { %v956_v39 = vsel %vm949_vm0, %v952_v56, %v955_v19  ;;  %v2773_v25 = vadd.s32 4294967294, %v1064_v27  ;;  %v1052_v4 = vadd.s32 %v3734_v33, %v3732_v42  ;;  %v1166_v45 = vmul.u32 %v1164_v14, %v1162_v41 }
 0x171   : > { %v957_v18 = vsel %vm4189_vm5, nan, %v956_v39  ;;  %v1169_v48 = vmul.u32 %v1165_v59, %v1163_v22  ;;  %v1170_v21 = vshll.u32 %v1167_v57, 16  ;;  %v1171_v56 = vshrl.u32 %v1167_v57, 16 }
 0x172   : > { %1427 = vst [vmem:[%s3353_s30 + $0x40] sm:$0xff] %v957_v18  ;;  %vm2774_vm6 = vcmp.lt.s32.totalorder %v2773_v25, 0  ;;  %v1172_v19 = vshll.u32 %v1168_v54, 16  ;;  %v1189_v30 = vmul.u32 %v1187_v52, %v1162_v41  ;;  %v1190_v7 = vmul.u32 %v1186_v46, %v1163_v22 }
 0x173   : > { %v1067_v6 = vsel %vm2774_vm6, 0, %v2773_v25  ;;  %vm1174_vm8 = vc.u32 %v1166_v45, %v1170_v21  ;;  %v1176_v39 = vadd.s32 %v1170_v21, %v1166_v45  ;;  %vm960_vm3 = vcmp.lt.s32.totalorder %v3559_v23, 0 }
 0x174   : > { %v1068_v51 = vsub.s32 32, %v1067_v6  ;;  %v1072_v27 = vsub.s32 4294967266, %v1067_v6  ;;  %v1175_v5 = vsel %vm1174_vm8, 1, %v2927_v0  ;;  %v1188_v18 = vmul.u32 %v1186_v46, %v1162_v41 }
 0x175   : > { %v1177_v31 = vadd.s32 %v1175_v5, %v1169_v48  ;;  %vm1178_vm0 = vc.u32 %v1176_v39, %v1172_v19  ;;  %v1191_v42 = vmul.u32 %v1187_v52, %v1163_v22  ;;  %v1192_v33 = vshll.u32 %v1189_v30, 16 }
 0x176   : > { %v1069_v14 = vshll.u32 %v1060_v36, %v1067_v6  ;;  %v1070_v59 = vshrl.u32 %v1052_v4, %v1068_v51  ;;  %v1073_v57 = vadd.s32 127, %v1072_v27  ;;  %v1179_v3 = vsel %vm1178_vm0, 1, %v2927_v0 }
 0x177   : > { %v1181_v25 = vadd.s32 %v1179_v3, %v1177_v31  ;;  %v1194_v53 = vshll.u32 %v1190_v7, 16  ;;  %vm1196_vm1 = vc.u32 %v1188_v18, %v1192_v33  ;;  %v1198_v45 = vadd.s32 %v1192_v33, %v1188_v18 }
 0x178   : > { %v1071_v21 = vor.u32 %v1070_v59, %v1069_v14  ;;  %v1074_v50 = vshll.u32 %v1073_v57, 23  ;;  %v1150_v44 = vsel %vm1148_vm11, %v3758_v32, 2102212464  ;;  %v1197_v41 = vsel %vm1196_vm1, 1, %v2927_v0 }
 0x179   : > { %v1082_v22 = vsub.s32 4, %v3762_v43  ;;  %v1182_v52 = vadd.s32 %v1181_v25, %v1171_v56  ;;  %v1199_v36 = vadd.s32 %v1197_v41, %v1191_v42  ;;  %vm1200_vm2 = vc.u32 %v1198_v45, %v1194_v53 }
 0x17a   : > { %v1075_v46 = vor.u32 4788187, %v1074_v50  ;;  %v1173_v4 = vshrl.u32 %v1168_v54, 16  ;;  %v1201_v3 = vsel %vm1200_vm2, 1, %v2927_v0  ;;  %v1271_v31 = vand.u32 2139095040, %v3812_v60 }
 0x17b   : > { %v1149_v48 = vsel %vm1145_vm12, %v1129_v63, %v3760_v47  ;;  %v1151_v32 = vsel %vm1147_vm13, %v3756_v11, %v1150_v44  ;;  %v1193_v19 = vshrl.u32 %v1189_v30, 16  ;;  %v1203_v6 = vadd.s32 %v1201_v3, %v1199_v36 }
 0x17c   : > { %v1076_v39 = vand.u32 2147483647, %v1075_v46  ;;  %v1078_v56 = vcvt.s32.f32 %v1071_v21  ;;  %v3835_v51 = vadd.s32 %v1182_v52, %v1173_v4  ;;  %v1272_v50 = vshrl.u32 %v1271_v31, 23 }
 0x17d   : > { %v1083_v54 = vsel %vm960_vm3, %v1082_v22, %v3762_v43  ;;  %v1195_v27 = vshrl.u32 %v1190_v7, 16  ;;  %v1204_v5 = vadd.s32 %v1203_v6, %v1193_v19  ;;  %v3840_v42 = vadd.s32 %v1198_v45, %v1194_v53 }
 0x17e   : > { %v1079_v18 = vmul.f32 %v1078_v56, %v1076_v39  ;;  %v4181_v47 = vand.u32 2147483647, %v3812_v60  ;;  %v2778_v63 = vadd.s32 4294967169, %v1272_v50  ;;  %v4203_v44 = vand.u32 2147483647, %v3559_v23 }
 0x17f   : > { %v1152_v11 = vsel %vm1146_vm15, %v1149_v48, %v1151_v32  ;;  %v1205_v30 = vadd.s32 %v1204_v5, %v1195_v27  ;;  %vm1208_vm12 = vc.u32 %v3835_v51, %v3840_v42 }
 0x180   : > { %vm959_vm11 = vcmp.le.f32.partialorder %v4203_v44, 0.7853982  ;;  %v1080_v33 = vxor.u32 2147483648, %v1079_v18  ;;  %v1278_v43 = vadd.s32 1, %v2778_v63  ;;  %v1206_v59 = vmul.u32 %v3787_v49, %v1152_v11 }
 0x181   : > { %v3847_v14 = vsel %vm959_vm11, 0, %v1083_v54  ;;  %v1209_v7 = vadd.s32 1, %v1205_v30  ;;  %v1275_v57 = vand.u32 8388607, %v4181_v47 }
 0x182   : > { %v1081_v53 = vsel %vm960_vm3, %v1080_v33, %v1079_v18  ;;  %vm1279_vm13 = vcmp.gt.s32.totalorder %v1278_v43, 0  ;;  %v1102_v25 = vadd.s32 3, %v3847_v14  ;;  %v4204_v18 = vmov 2131351028  }
 0x183   : > { %v1084_v12 = vsel %vm959_vm11, %v3559_v23, %v1081_v53  ;;  %v1210_v45 = vsel %vm1208_vm12, %v1209_v7, %v1205_v30  ;;  %v1280_v21 = vsel %vm1279_vm13, %v1278_v43, 0  ;;  %v1276_v3 = vor.u32 8388608, %v1275_v57 }
 0x184   : > { %v1086_v41 = vmul.f32 %v1084_v12, %v1084_v12  ;;  %v1211_v22 = vadd.s32 %v1210_v45, %v1206_v59  ;;  %v1282_v52 = vand.u32 31, %v1280_v21  ;;  %v3858_v31 = vand.u32 3, %v1102_v25 }
 0x185   : > { %v3865_v50 = vshll.u32 %v1276_v3, 8  ;;  %v3868_v54 = vshrl.u32 %v1280_v21, 5  ;;  %v4205_v33 = vmov 920167782   ;;  %v4206_v53 = vmov 2102212464  }
 0x186   : > { %v1087_v36 = vmul.f32 -0.001358992, %v1086_v41  ;;  %v1094_v46 = vmul.f32 -0.00019511016, %v1086_v41  ;;  %v1212_v4 = vadd.s32 536870912, %v1211_v22  ;;  %v3860_v49 = vsub.s32 32, %v1282_v52 }
 0x187   : > { %vm1108_vm15 = vcmp.eq.s32.totalorder %v3858_v31, 2  ;;  %v1285_v27 = vshll.u32 %v4184_v38, %v1282_v52  ;;  %vm1105_vm4 = vcmp.eq.s32.totalorder %v3858_v31, 0  ;;  %v1288_v7 = vshll.u32 %v2929_v40, %v1282_v52 }
 0x188   : > { %v1088_v48 = vadd.f32 0.041655596, %v1087_v36  ;;  %v1095_v32 = vadd.f32 0.008332121, %v1094_v46  ;;  %v3862_v19 = vshrl.u32 %v1212_v4, 30  ;;  %v1286_v5 = vshrl.u32 %v2929_v40, %v3860_v49 }
 0x189   : > { %v1289_v63 = vshrl.u32 %v4204_v18, %v3860_v49  ;;  %v1295_v43 = vshrl.u32 %v4205_v33, %v3860_v49  ;;  %v1292_v59 = vshrl.u32 %v4206_v53, %v3860_v49  ;;  %v1294_v57 = vshll.u32 %v4206_v53, %v1282_v52 }
 0x18a   : > { %v1089_v6 = vmul.f32 %v1088_v48, %v1086_v41  ;;  %v1096_v39 = vmul.f32 %v1095_v32, %v1086_v41  ;;  %v1214_v56 = vshll.u32 %v3862_v19, 30  ;;  %v4207_v25 = vmov 1326507024  }
 0x18b   : > { %v1298_v45 = vshrl.u32 %v4207_v25, %v3860_v49  ;;  %vm1104_vm6 = vcmp.lt.s32.totalorder %v3858_v31, 2  ;;  %vm4187_vm3 = vweird.f32 %v3559_v23  ;;  %v3886_v46 = vor.u32 %v1286_v5, %v1285_v27 }
 0x18c   : > { %v1090_v44 = vadd.f32 -0.4999988, %v1089_v6  ;;  %v1097_v11 = vadd.f32 -0.16666654, %v1096_v39  ;;  %v1215_v30 = vsub.s32 %v1211_v22, %v1214_v56  ;;  %v3888_v4 = vor.u32 %v1289_v63, %v1288_v7 }
 0x18d   : > { %v1291_v40 = vshll.u32 %v4204_v18, %v1282_v52  ;;  %v1297_v3 = vshll.u32 %v4205_v33, %v1282_v52  ;;  %v1296_v39 = vor.u32 %v1295_v43, %v1294_v57  ;;  %vm1300_vm0 = vcmp.lt.s32.totalorder %v3868_v54, 1 }
 0x18e   : > { %v1091_v21 = vmul.f32 %v1090_v44, %v1086_v41  ;;  %v1098_v36 = vmul.f32 %v1097_v11, %v1086_v41  ;;  %vm1216_vm8 = vcmp.lt.s32.totalorder %v1215_v30, 0  ;;  %v1217_v22 = vsub.s32 0, %v1215_v30 }
 0x18f   : > { %v1207_v41 = vadd.s32 %v3840_v42, %v3835_v51  ;;  %v3896_v44 = vor.u32 %v1292_v59, %v1291_v40  ;;  %v1299_v11 = vor.u32 %v1298_v45, %v1297_v3  ;;  %v1317_v52 = vand.u32 65535, %v3865_v50 }
 0x190   : > { %v3892_v48 = vadd.f32 1.0, %v1091_v21  ;;  %v1099_v32 = vadd.f32 1.0, %v1098_v36  ;;  %v1218_v6 = vsel %vm1216_vm8, %v1217_v22, %v1215_v30  ;;  %vm1301_vm1 = vcmp.lt.s32.totalorder %v3868_v54, 2 }
 0x191   : > { %v1219_v56 = vclz %v1218_v6  ;;  %vm1303_vm2 = vcmp.lt.s32.totalorder %v3868_v54, 4  ;;  %v1308_v51 = vsel %vm1300_vm0, %v3886_v46, %v3888_v4  ;;  %vm1302_vm11 = vcmp.lt.s32.totalorder %v3868_v54, 3 }
 0x192   : > { %v3898_v27 = vmul.f32 %v1099_v32, %v1084_v12  ;;  %v4183_v5 = vxor.u32 2147483648, %v3892_v48  ;;  %v1309_v63 = vsel %vm1303_vm2, %v1296_v39, 920167782  ;;  %v1312_v43 = vsel %vm1300_vm0, %v3888_v4, %v3896_v44 }
 0x193   : > { %v2776_v18 = vadd.s32 4294967294, %v1219_v56  ;;  %v1310_v33 = vsel %vm1302_vm11, %v3896_v44, %v1309_v63  ;;  %v1313_v7 = vsel %vm1303_vm2, %v1299_v11, 1326507024  ;;  %vm1115_vm13 = vcmp.lt.s32.totalorder %v3565_v62, 0 }
 0x194   : > { %v4182_v42 = vxor.u32 2147483648, %v3898_v27  ;;  %v1110_v12 = vsel %vm1108_vm15, %v4183_v5, %v3898_v27  ;;  %v1311_v57 = vsel %vm1301_vm1, %v1308_v51, %v1310_v33  ;;  %v1314_v25 = vsel %vm1302_vm11, %v1296_v39, %v1313_v7 }
 0x195   : > { %vm2777_vm12 = vcmp.lt.s32.totalorder %v2776_v18, 0  ;;  %v1315_v3 = vsel %vm1301_vm1, %v1312_v43, %v1314_v25  ;;  %v1341_v32 = vand.u32 65535, %v1311_v57  ;;  %v1342_v6 = vshrl.u32 %v1311_v57, 16 }
 0x196   : > { %v1107_v53 = vsel %vm1105_vm4, %v3892_v48, %v4182_v42  ;;  %v1222_v59 = vsel %vm2777_vm12, 0, %v2776_v18  ;;  %v1319_v18 = vand.u32 65535, %v1315_v3  ;;  %v1320_v51 = vshrl.u32 %v1315_v3, 16 }
 0x197   : > { %v1111_v45 = vsel %vm1104_vm6, %v1107_v53, %v1110_v12  ;;  %v1223_v21 = vsub.s32 32, %v1222_v59  ;;  %v1224_v36 = vshll.u32 %v1215_v30, %v1222_v59  ;;  %v1227_v22 = vsub.s32 4294967266, %v1222_v59 }
 0x198   : > { %v1112_v40 = vsel %vm4187_vm3, nan, %v1111_v45  ;;  %v1318_v39 = vshrl.u32 %v3865_v50, 16  ;;  %v1344_v31 = vmul.u32 %v1342_v6, %v1317_v52  ;;  %v1322_v30 = vmul.u32 %v1320_v51, %v1317_v52 }
 0x199   : > { %v1225_v56 = vshrl.u32 %v1207_v41, %v1223_v21  ;;  %v1228_v11 = vadd.s32 127, %v1227_v22  ;;  %1428 = vst [vmem:[%s3353_s30 + $0x48] sm:$0xff] %v1112_v40  ;;  %v4208_v43 = vand.u32 2147483647, %v3565_v62  ;;  %v1321_v57 = vmul.u32 %v1319_v18, %v1317_v52 }
 0x19a   : > { %v1323_v33 = vmul.u32 %v1319_v18, %v1318_v39  ;;  %v1345_v7 = vmul.u32 %v1341_v32, %v1318_v39  ;;  %v1347_v53 = vshll.u32 %v1344_v31, 16  ;;  %v1325_v25 = vshll.u32 %v1322_v30, 16 }
 0x19b   : > { %v1226_v12 = vor.u32 %v1225_v56, %v1224_v36  ;;  %v1229_v63 = vshll.u32 %v1228_v11, 23  ;;  %vm3947_vm15 = vcmp.le.f32.partialorder %v4208_v43, 0.7853982  ;;  %v1343_v45 = vmul.u32 %v1341_v32, %v1317_v52 }
 0x19c   : > { %v1324_v22 = vmul.u32 %v1320_v51, %v1318_v39  ;;  %v1327_v36 = vshll.u32 %v1323_v33, 16  ;;  %v1346_v40 = vmul.u32 %v1342_v6, %v1318_v39  ;;  %vm1329_vm4 = vc.u32 %v1321_v57, %v1325_v25 }
 0x19d   : > { %v1230_v41 = vor.u32 4788187, %v1229_v63  ;;  %v1233_v21 = vcvt.s32.f32 %v1226_v12  ;;  %v1331_v56 = vadd.s32 %v1325_v25, %v1321_v57  ;;  %vm1351_vm6 = vc.u32 %v1343_v45, %v1347_v53 }
 0x19e   : > { %v1330_v11 = vsel %vm1329_vm4, 1, %v2927_v0  ;;  %v1349_v47 = vshll.u32 %v1345_v7, 16  ;;  %v1352_v43 = vsel %vm1351_vm6, 1, %v2927_v0  ;;  %v1353_v42 = vadd.s32 %v1347_v53, %v1343_v45 }
 0x19f   : > { %v1231_v3 = vand.u32 2147483647, %v1230_v41  ;;  %v1332_v38 = vadd.s32 %v1330_v11, %v1324_v22  ;;  %vm1333_vm8 = vc.u32 %v1331_v56, %v1327_v36  ;;  %v1354_v18 = vadd.s32 %v1352_v43, %v1346_v40 }
 0x1a0   : > { %v4211_v52 = vmov 683565275   ;;  %v1305_v6 = vsel %vm1303_vm2, %v3896_v44, 2102212464  ;;  %v1334_v51 = vsel %vm1333_vm8, 1, %v2927_v0  ;;  %vm1355_vm12 = vc.u32 %v1353_v42, %v1349_v47 }
 0x1a1   : > { %v1234_v5 = vmul.f32 %v1233_v21, %v1231_v3  ;;  %v1284_v32 = vshrl.u32 %v4211_v52, %v3860_v49  ;;  %v1326_v12 = vshrl.u32 %v1322_v30, 16  ;;  %v1336_v63 = vadd.s32 %v1334_v51, %v1332_v38 }
 0x1a2   : > { %v1356_v41 = vsel %vm1355_vm12, 1, %v2927_v0  ;;  %v1237_v53 = vsub.s32 4, %v3862_v19  ;;  %v1348_v25 = vshrl.u32 %v1344_v31, 16  ;;  %v1306_v44 = vsel %vm1302_vm11, %v3888_v4, %v1305_v6 }
 0x1a3   : > { %v1235_v39 = vxor.u32 2147483648, %v1234_v5  ;;  %v1304_v57 = vsel %vm1300_vm0, %v1284_v32, %v3886_v46  ;;  %v1358_v49 = vadd.s32 %v1356_v41, %v1354_v18  ;;  %v1328_v21 = vshrl.u32 %v1323_v33, 16 }
 0x1a4   : > { %v1337_v30 = vadd.s32 %v1336_v63, %v1326_v12  ;;  %v1350_v38 = vshrl.u32 %v1345_v7, 16  ;;  %v1357_v46 = vadd.s32 %v1353_v42, %v1349_v47  ;;  %v1238_v31 = vsel %vm1115_vm13, %v1237_v53, %v3862_v19 }
 0x1a5   : > { %v1236_v45 = vsel %vm1115_vm13, %v1235_v39, %v1234_v5  ;;  %v1359_v22 = vadd.s32 %v1358_v49, %v1348_v25  ;;  %v1307_v5 = vsel %vm1301_vm1, %v1304_v57, %v1306_v44  ;;  %v1240_v11 = vsel %vm3947_vm15, 0, %v1238_v31 }
 0x1a6   : > { %v1239_v0 = vsel %vm3947_vm15, %v3565_v62, %v1236_v45  ;;  %v1338_v40 = vadd.s32 %v1337_v30, %v1328_v21  ;;  %v1361_v18 = vmul.u32 %v3865_v50, %v1307_v5  ;;  %v1257_v19 = vadd.s32 3, %v1240_v11 }
 0x1a7   : > { %v1241_v36 = vmul.f32 %v1239_v0, %v1239_v0  ;;  %v1360_v3 = vadd.s32 %v1359_v22, %v1350_v38  ;;  %v1575_v50 = vand.u32 3, %v3200_v15  ;;  %vm4188_vm1 = vweird.f32 %v3565_v62 }
 0x1a8   : > { %vm1363_vm0 = vc.u32 %v1338_v40, %v1357_v46  ;;  %v1258_v41 = vand.u32 3, %v1257_v19  ;;  %v1729_v44 = vand.u32 3, %v3323_v24  ;;  %v3997_v15 = vand.u32 3, %v3467_v35 }
 0x1a9   : > { %v1242_v4 = vmul.f32 -0.001358992, %v1241_v36  ;;  %v1249_v33 = vmul.f32 -0.00019511016, %v1241_v36  ;;  %v1364_v56 = vadd.s32 1, %v1360_v3  ;;  %vm1576_vm4 = vcmp.lt.s32.totalorder %v1575_v50, 2 }
 0x1aa   : > { %vm1259_vm2 = vcmp.lt.s32.totalorder %v1258_v41, 2  ;;  %vm1260_vm11 = vcmp.eq.s32.totalorder %v1258_v41, 0  ;;  %vm1263_vm13 = vcmp.eq.s32.totalorder %v1258_v41, 2  ;;  %vm1577_vm6 = vcmp.eq.s32.totalorder %v1575_v50, 0 }
 0x1ab   : > { %v1243_v7 = vadd.f32 0.041655596, %v1242_v4  ;;  %v1250_v43 = vadd.f32 0.008332121, %v1249_v33  ;;  %v1365_v47 = vsel %vm1363_vm0, %v1364_v56, %v1360_v3  ;;  %v2191_v38 = vand.u32 3, %v3705_v13 }
 0x1ac   : > { %v1366_v32 = vadd.s32 %v1365_v47, %v1361_v18  ;;  %v2345_v31 = vand.u32 3, %v3847_v14  ;;  %vm1580_vm8 = vcmp.eq.s32.totalorder %v1575_v50, 2  ;;  %vm1731_vm0 = vcmp.eq.s32.totalorder %v1729_v44, 0 }
 0x1ad   : > { %v1244_v42 = vmul.f32 %v1243_v7, %v1241_v36  ;;  %v1251_v52 = vmul.f32 %v1250_v43, %v1241_v36  ;;  %vm1734_vm10 = vcmp.eq.s32.totalorder %v1729_v44, 2  ;;  %v4014_v13 = vand.u32 3, %v1240_v11 }
 0x1ae   : > { %v1367_v51 = vadd.s32 536870912, %v1366_v32  ;;  %v1362_v3 = vadd.s32 %v1357_v46, %v1338_v40  ;;  %vm1884_vm7 = vcmp.lt.s32.totalorder %v3997_v15, 2  ;;  %vm2193_vm5 = vcmp.eq.s32.totalorder %v2191_v38, 0 }
 0x1af   : > { %v1245_v6 = vadd.f32 -0.4999988, %v1244_v42  ;;  %v1252_v54 = vadd.f32 -0.16666654, %v1251_v52  ;;  %vm2196_vm14 = vcmp.eq.s32.totalorder %v2191_v38, 2  ;;  %vm2346_vm12 = vcmp.lt.s32.totalorder %v2345_v31, 2 }
 0x1b0   : > { %v3980_v63 = vshrl.u32 %v1367_v51, 30  ;;  %v4212_v14 = vxor.u32 2147483648, %v3303_v2  ;;  %v4213_v33 = vxor.u32 2147483648, %v3379_v34  ;;  %v4214_v11 = vxor.u32 2147483648, %v3771_v16 }
 0x1b1   : > { %v1246_v39 = vmul.f32 %v1245_v6, %v1241_v36  ;;  %v1253_v12 = vmul.f32 %v1252_v54, %v1241_v36  ;;  %v4215_v43 = vxor.u32 2147483648, %v3892_v48  ;;  %vm2500_vm3 = vcmp.lt.s32.totalorder %v4014_v13, 2 }
 0x1b2   : > { %v1369_v57 = vshll.u32 %v3980_v63, 30  ;;  %v1582_v40 = vsel %vm1580_vm8, %v4212_v14, %v3311_v17  ;;  %v1736_v56 = vsel %vm1734_vm10, %v4213_v33, %v3389_v29  ;;  %v2198_v7 = vsel %vm2196_vm14, %v4214_v11, %v3789_v8 }
 0x1b3   : > { %v3982_v53 = vadd.f32 1.0, %v1246_v39  ;;  %v1254_v59 = vadd.f32 1.0, %v1253_v12  ;;  %v4217_v54 = vxor.u32 2147483648, %v3389_v29  ;;  %v4218_v39 = vxor.u32 2147483648, %v3789_v8 }
 0x1b4   : > { %v3989_v45 = vsub.s32 %v1366_v32, %v1369_v57  ;;  %v4216_v32 = vxor.u32 2147483648, %v3311_v17  ;;  %v4219_v41 = vxor.u32 2147483648, %v3898_v27  ;;  %vm4221_vm14 = vcmp.lt.s32.totalorder %v1729_v44, 2 }
 0x1b5   : > { %v3986_v25 = vmul.f32 %v1254_v59, %v1239_v0  ;;  %v1264_v49 = vxor.u32 2147483648, %v3982_v53  ;;  %v4000_v0 = vand.u32 3, %v3597_v28  ;;  %v1733_v51 = vsel %vm1731_vm0, %v3379_v34, %v4217_v54 }
 0x1b6   : > { %vm1371_vm15 = vcmp.lt.s32.totalorder %v3989_v45, 0  ;;  %v1372_v30 = vsub.s32 0, %v3989_v45  ;;  %v1579_v19 = vsel %vm1577_vm6, %v3303_v2, %v4216_v32  ;;  %v2195_v12 = vsel %vm2193_vm5, %v3771_v16, %v4218_v39 }
 0x1b7   : > { %v1261_v21 = vxor.u32 2147483648, %v3986_v25  ;;  %v1265_v22 = vsel %vm1263_vm13, %v1264_v49, %v3986_v25  ;;  %vm2350_vm13 = vcmp.eq.s32.totalorder %v2345_v31, 2  ;;  %v1583_v6 = vsel %vm1576_vm4, %v1579_v19, %v1582_v40 }
 0x1b8   : > { %v1373_v36 = vsel %vm1371_vm15, %v1372_v30, %v3989_v45  ;;  %vm2039_vm15 = vcmp.eq.s32.totalorder %v4000_v0, 0  ;;  %v2352_v18 = vsel %vm2350_vm13, %v4215_v43, %v3898_v27  ;;  %v1737_v29 = vsel %vm4221_vm14, %v1733_v51, %v1736_v56 }
 0x1b9   : > { %v1262_v24 = vsel %vm1260_vm11, %v3982_v53, %v1261_v21  ;;  %v1374_v5 = vclz %v1373_v36  ;;  %vm2347_vm11 = vcmp.eq.s32.totalorder %v2345_v31, 0  ;;  %vm4222_vm10 = vweird.f32 %v3016_v10 }
 0x1ba   : > { %v1266_v35 = vsel %vm1259_vm2, %v1262_v24, %v1265_v22  ;;  %vm2042_vm2 = vcmp.eq.s32.totalorder %v4000_v0, 2  ;;  %v2349_v17 = vsel %vm2347_vm11, %v3892_v48, %v4219_v41  ;;  %v1738_v34 = vsel %vm4222_vm10, nan, %v1737_v29 }
 0x1bb   : > { %v1267_v28 = vsel %vm4188_vm1, nan, %v1266_v35  ;;  %v2779_v4 = vadd.s32 4294967294, %v1374_v5  ;;  %vm2192_vm1 = vcmp.lt.s32.totalorder %v2191_v38, 2  ;;  %v2353_v50 = vsel %vm2346_vm12, %v2349_v17, %v2352_v18  ;;  %2664 = vst [vmem:[%s3353_s30 + $0x18] sm:$0xff] %v1738_v34 }
 0x1bc   : > { %1429 = vst [vmem:[%s3353_s30 + $0x60] sm:$0xff] %v1267_v28  ;;  %v2199_v8 = vsel %vm2192_vm1, %v2195_v12, %v2198_v7  ;;  %vm2501_vm5 = vcmp.eq.s32.totalorder %v4014_v13, 0  ;;  %vm4223_vm4 = vweird.f32 %v3225_v37  ;;  %vm4224_vm6 = vweird.f32 %v3559_v23 }
 0x1bd   : > { %vm2780_vm9 = vcmp.lt.s32.totalorder %v2779_v4, 0  ;;  %v2354_v27 = vsel %vm4224_vm6, nan, %v2353_v50  ;;  %v4225_v10 = vxor.u32 2147483648, %v3532_v1  ;;  %vm4226_vm1 = vcmp.eq.s32.totalorder %v3997_v15, 0 }
 0x1be   : > { %v1377_v46 = vsel %vm2780_vm9, 0, %v2779_v4  ;;  %vm4220_vm9 = vweird.f32 %v3013_v9  ;;  %v2200_v9 = vsel %vm4223_vm4, nan, %v2199_v8  ;;  %v4227_v44 = vxor.u32 2147483648, %v3520_v61  ;;  %2668 = vst [vmem:[%s3353_s30 + $0x58] sm:$0xff] %v2354_v27 }
 0x1bf   : > { %v1378_v47 = vsub.s32 32, %v1377_v46  ;;  %v1379_v42 = vshll.u32 %v3989_v45, %v1377_v46  ;;  %v1382_v52 = vsub.s32 4294967266, %v1377_v46  ;;  %v1584_v2 = vsel %vm4220_vm9, nan, %v1583_v6  ;;  %2667 = vst [vmem:[%s3353_s30 + $0x50] sm:$0xff] %v2200_v9 }
 0x1c0   : > { %2663 = vst [vmem:[%s3353_s30 + $0x10] sm:$0xff] %v1584_v2  ;;  %v1887_v45 = vsel %vm4226_vm1, %v3520_v61, %v4225_v10  ;;  %vm4228_vm8 = vcmp.eq.s32.totalorder %v3997_v15, 2  ;;  %v4229_v38 = vxor.u32 2147483648, %v3649_v58  ;;  %v4230_v23 = vxor.u32 2147483648, %v3642_v20 }
 0x1c1   : > { %v1380_v59 = vshrl.u32 %v1362_v3, %v1378_v47  ;;  %v1383_v57 = vadd.s32 127, %v1382_v52  ;;  %v1890_v30 = vsel %vm4228_vm8, %v4227_v44, %v3532_v1  ;;  %vm4231_vm12 = vcmp.lt.s32.totalorder %v4000_v0, 2 }
 0x1c2   : > { %v2041_v37 = vsel %vm2039_vm15, %v3642_v20, %v4229_v38  ;;  %v2044_v24 = vsel %vm2042_vm2, %v4230_v23, %v3649_v58  ;;  %v1891_v61 = vsel %vm1884_vm7, %v1887_v45, %v1890_v30  ;;  %vm2504_vm0 = vcmp.eq.s32.totalorder %v4014_v13, 2 }
 0x1c3   : > { %v1381_v16 = vor.u32 %v1380_v59, %v1379_v42  ;;  %v1384_v48 = vshll.u32 %v1383_v57, 23  ;;  %v2045_v1 = vsel %vm4231_vm12, %v2041_v37, %v2044_v24  ;;  %vm4232_vm11 = vweird.f32 %v3030_v26 }
 0x1c4   : > { %v1892_v36 = vsel %vm4232_vm11, nan, %v1891_v61  ;;  %vm4233_vm13 = vweird.f32 %v3221_v55  ;;  %v2503_v58 = vsel %vm2501_vm5, %v3982_v53, %v1261_v21  ;;  %v2506_v15 = vsel %vm2504_vm0, %v1264_v49, %v3986_v25 }
 0x1c5   : > { %v1385_v22 = vor.u32 4788187, %v1384_v48  ;;  %v2046_v20 = vsel %vm4233_vm13, nan, %v2045_v1  ;;  %v1388_v31 = vcvt.s32.f32 %v1381_v16  ;;  %v2507_v35 = vsel %vm2500_vm3, %v2503_v58, %v2506_v15  ;;  %2665 = vst [vmem:[%s3353_s30 + $0x30] sm:$0xff] %v1892_v36 }
 0x1c6   : > { %vm4234_vm7 = vweird.f32 %v3565_v62  ;;  %2666 = vst [vmem:[%s3353_s30 + $0x38] sm:$0xff] %v2046_v20  ;;  %vm1270_vm15 = vcmp.lt.s32.totalorder %v3812_v60, 0  ;;  %v4235_v21 = vand.u32 2147483647, %v3812_v60  ;;  %v1392_v25 = vsub.s32 4, %v3980_v63 }
 0x1c7   : > { %v1386_v0 = vand.u32 2147483647, %v1385_v22  ;;  %v2508_v26 = vsel %vm4234_vm7, nan, %v2507_v35  ;;  %vm1411_vm6 = vweird.f32 %v3812_v60 }
 0x1c8   : > { %2669 = vst [vmem:[%s3353_s30 + $0x70] sm:$0xff] %v2508_v26  ;;  %vm1269_vm2 = vcmp.le.f32.partialorder %v4235_v21, 0.7853982  ;;  %v1393_v62 = vsel %vm1270_vm15, %v1392_v25, %v3980_v63 }
 0x1c9   : > { %v1389_v55 = vmul.f32 %v1388_v31, %v1386_v0  ;;  %v1395_v40 = vsel %vm1269_vm2, 0, %v1393_v62 }
 0x1ca   : > { %v1412_v7 = vadd.s32 3, %v1395_v40  ;;  %v2653_v52 = vand.u32 3, %v1395_v40 }
 0x1cb   : > { %v1390_v5 = vxor.u32 2147483648, %v1389_v55 }
 0x1cc   : > { %v1413_v32 = vand.u32 3, %v1412_v7  ;;  %vm2654_vm3 = vcmp.lt.s32.totalorder %v2653_v52, 2  ;;  %vm2655_vm9 = vcmp.eq.s32.totalorder %v2653_v52, 0  ;;  %vm2658_vm4 = vcmp.eq.s32.totalorder %v2653_v52, 2 }
 0x1cd   : > { %v1391_v53 = vsel %vm1270_vm15, %v1390_v5, %v1389_v55 }
 0x1ce   : > { %v1394_v49 = vsel %vm1269_vm2, %v3812_v60, %v1391_v53  ;;  %vm1414_vm14 = vcmp.lt.s32.totalorder %v1413_v32, 2  ;;  %vm1415_vm10 = vcmp.eq.s32.totalorder %v1413_v32, 0  ;;  %vm1418_vm5 = vcmp.eq.s32.totalorder %v1413_v32, 2 }
 0x1cf   : > { %v1396_v28 = vmul.f32 %v1394_v49, %v1394_v49 }
 0x1d1   : > { %v1397_v13 = vmul.f32 -0.001358992, %v1396_v28  ;;  %v1404_v3 = vmul.f32 -0.00019511016, %v1396_v28 }
 0x1d3   : > { %v1398_v4 = vadd.f32 0.041655596, %v1397_v13  ;;  %v1405_v14 = vadd.f32 0.008332121, %v1404_v3 }
 0x1d5   : > { %v1399_v46 = vmul.f32 %v1398_v4, %v1396_v28  ;;  %v1406_v33 = vmul.f32 %v1405_v14, %v1396_v28 }
 0x1d7   : > { %v1400_v56 = vadd.f32 -0.4999988, %v1399_v46  ;;  %v1407_v11 = vadd.f32 -0.16666654, %v1406_v33 }
 0x1d9   : > { %v1401_v43 = vmul.f32 %v1400_v56, %v1396_v28  ;;  %v1408_v18 = vmul.f32 %v1407_v11, %v1396_v28 }
 0x1db   : > { %v1402_v47 = vadd.f32 1.0, %v1401_v43  ;;  %v1409_v42 = vadd.f32 1.0, %v1408_v18 }
 0x1dd   : > { %v1410_v19 = vmul.f32 %v1409_v42, %v1394_v49  ;;  %v1419_v6 = vxor.u32 2147483648, %v1402_v47 }
 0x1df   : > { %v1416_v63 = vxor.u32 2147483648, %v1410_v19  ;;  %v1420_v51 = vsel %vm1418_vm5, %v1419_v6, %v1410_v19  ;;  %v2660_v12 = vsel %vm2658_vm4, %v1419_v6, %v1410_v19 }
 0x1e1   : > { %v1417_v54 = vsel %vm1415_vm10, %v1402_v47, %v1416_v63  ;;  %v2657_v39 = vsel %vm2655_vm9, %v1402_v47, %v1416_v63 }
 0x1e2   : > { %v1421_v41 = vsel %vm1414_vm14, %v1417_v54, %v1420_v51  ;;  %v2661_v17 = vsel %vm2654_vm3, %v2657_v39, %v2660_v12 }
 0x1e3   : > { %v1422_v59 = vsel %vm1411_vm6, nan, %v1421_v41  ;;  %v2662_v57 = vsel %vm1411_vm6, nan, %v2661_v17 }
 0x1e4   : > { %1430 = vst [vmem:[%s3353_s30 + $0x68] sm:$0xff] %v1422_v59 }
 0x1e5   : > { %2670 = vst [vmem:[%s3353_s30 + $0x78] sm:$0xff] %v2662_v57 }
 0x1e6   : > { %2890 = shalt.err (!%p2887_p3)
}
 0x1e7   : > { %s2934_s25 = smov 512   ;;  %s2935_s26 = smov 32  }
 0x1e8   : > { %2813 = dma.vmem_to_hbm [thread:$0]  (%p2989_p5), %s2686_s7, 2048, %s2688_s8, %s2672_s13, %s2934_s25, %s2934_s25, %s2935_s26  }
 0x1e9 PF: > { %p2819_p4 = scmp.ge.s32.totalorder %s2925_s12, 2  ;;  %s2702_s27 = sand.u32 1, %s2913_s9  }
 0x1ea   : > { %s2703_s28 = scalar_lea.sflag [#allocation3], %s2702_s27 }
 0x1eb   : > { %p2816_p7 = pnand %p2819_p4, %p2993_p6 }
 0x1ed   : > { %p2817_p8 = pneg %p2816_p7 }
 0x1ef   : > { %2908 = dma.done.wait (%p2817_p8), %s2703_s28, 2048  }
 0x1f0   : > { %2910 = vsyncadd (%p2817_p8), %s2703_s28, 4294965248  ;;  %p12_p9 = scmp.ge.s32.totalorder %s2976_s15, 6   ;;  %s4236_s9 = smov %s2917_s10 }
 0x1f1   : > { %s4237_s10 = smov %s2921_s11  ;;  %s4238_s11 = smov %s2987_s18 }
 0x1f2   : > { %s4239_s12 = smov %s2976_s15  ;;  %14 = sbr.rel (!%p12_p9) target bundleno = 3 (0x3), region = 63 }
 0x1f7   :  { %2709 = vsyncpa [#allocation3], 1 }
 0x1f8   :  { %2711 = vsyncpa [#allocation3 + $0x1], 1 }

</bundles_post_ra>
